<compile_context>
chip_gen: v7x
topology: tpu7x:2x2x1
jax: 0.10.0
libtpu: 0.0.40
codegen_flags: <defaults>
</compile_context>

<pallas_src>
import math

import jax
import jax.numpy as jnp
from jax.experimental import pallas as pl
from jax.experimental.pallas import tpu as pltpu

# ----------------------------- model config ---------------------------------
B = 2            # batch (number of text prompts)
S = 8            # tokens per prompt
V = 128          # synthetic vocab size
D = 128          # hidden size (lane-dense)
NH = 4           # attention heads
HD = D // NH     # head dim
FF = 256         # FFN inner dim
NLAYERS = 2
P = 128          # CLAP joint-embedding dim == Conditioner output_dim (proj_out = Identity)
EPS = 1e-5
W_ROWS = 2 * D   # weight-slab rows (w2 needs FF=256 rows; others use rows 0:D)


# --------------------- packed-slab column layout -----------------------------
def _build_offsets():
    w_off, b_off = {}, {}
    c = 0

    def add_w(name, cols):
        nonlocal c
        w_off[name] = (c, cols)
        c += cols

    add_w("emb", D)
    for li in range(NLAYERS):
        add_w(f"wqkv{li}", 3 * D)
        add_w(f"wo{li}", D)
        add_w(f"w1{li}", FF)
        add_w(f"w2{li}", D)
    add_w("pool_w", D)
    add_w("proj1_w", P)
    add_w("proj2_w", P)
    w_total = c

    c = 0

    def add_b(name, cols):
        nonlocal c
        b_off[name] = (c, cols)
        c += cols

    add_b("emb_ln_g", D)
    add_b("emb_ln_b", D)
    for li in range(NLAYERS):
        add_b(f"bqkv{li}", 3 * D)
        add_b(f"bo{li}", D)
        add_b(f"ln1_g{li}", D)
        add_b(f"ln1_b{li}", D)
        add_b(f"b1{li}", FF)
        add_b(f"b2{li}", D)
        add_b(f"ln2_g{li}", D)
        add_b(f"ln2_b{li}", D)
    add_b("pool_b", D)
    add_b("proj1_b", P)
    add_b("proj2_b", P)
    b_total = c
    return w_off, w_total, b_off, b_total


W_OFF, W_COLS, B_OFF, B_COLS = _build_offsets()


# ----------------------------- fused kernel ---------------------------------
def _clap_text_kernel(ids_ref, mask_ref, pos_ref, w_ref, b_ref, o_ref):
    # static, 128-aligned slices of the packed slabs (free ref views)
    def wsl(name, rows=D):
        c, n = W_OFF[name]
        return w_ref[0:rows, c:c + n]                    # bf16 (rows, n)

    def bsl(name):
        c, n = B_OFF[name]
        return b_ref[0:1, c:c + n]                       # f32 (1, n)

    def ln(x, g, b):
        # var = E[x^2] - mu^2 -> the two XLU reductions are independent
        mu = jnp.mean(x, axis=-1, keepdims=True)
        ex2 = jnp.mean(x * x, axis=-1, keepdims=True)
        var = ex2 - mu * mu
        return (x - mu) * jax.lax.rsqrt(var + EPS) * g + b

    def dense(x, w, b):
        # bf16 MXU matmul with f32 accumulation; bias kept in f32.
        return jnp.dot(x.astype(jnp.bfloat16), w,
                       preferred_element_type=jnp.float32) + b

    ids = ids_ref[0, :, :]                               # (S, 1) int32
    mask = mask_ref[0, :, :]                             # (1, S) f32

    # --- embeddings: one-hot @ table keeps the "gather" on the MXU, in-kernel.
    tok_iota = jax.lax.broadcasted_iota(jnp.int32, (S, V), 1)
    onehot = (tok_iota == ids).astype(jnp.bfloat16)      # (S, V)
    h = jnp.dot(onehot, wsl("emb", V), preferred_element_type=jnp.float32)
    h = h + pos_ref[...]                                 # (S, D), pos added in-kernel
    h = ln(h, bsl("emb_ln_g"), bsl("emb_ln_b"))

    # per-sequence key-padding bias (no block-diagonal / //S math needed)
    key_bias = jnp.where(mask > 0.5, 0.0, -1e9).astype(jnp.float32)   # (1, S)

    for li in range(NLAYERS):
        # ---- self-attention (post-LN) ----
        qkv = dense(h, wsl(f"wqkv{li}", D), bsl(f"bqkv{li}"))          # (S, 3D)
        q = qkv[:, 0 * D:1 * D]
        k = qkv[:, 1 * D:2 * D]
        v = qkv[:, 2 * D:3 * D]
        ctx_heads = []
        for hh in range(NH):                                           # all heads, one program
            sl = slice(hh * HD, (hh + 1) * HD)
            qh = q[:, sl].astype(jnp.bfloat16)
            kh = k[:, sl].astype(jnp.bfloat16)
            vh = v[:, sl].astype(jnp.bfloat16)
            # contract on last dims -> no explicit k.T; 1/sqrt(HD) folded into Wqkv.
            s = jax.lax.dot_general(qh, kh, (((1,), (1,)), ((), ())),
                                    preferred_element_type=jnp.float32)  # (S, S)
            s = s + key_bias
            m = jnp.max(s, axis=-1, keepdims=True)
            p = jnp.exp(s - m)
            denom = jnp.sum(p, axis=-1, keepdims=True)
            # deferred softmax normalization: start the p @ v MXU push immediately,
            # apply the exact per-row 1/denom after the matmul.
            ctx_h = jnp.dot(p.astype(jnp.bfloat16), vh,
                            preferred_element_type=jnp.float32)          # (S, HD)
            ctx_heads.append(ctx_h / denom)
        ctx = jnp.concatenate(ctx_heads, axis=-1)                        # (S, D)
        attn = dense(ctx, wsl(f"wo{li}", D), bsl(f"bo{li}"))             # single K=128 Wo matmul
        h = ln(h + attn, bsl(f"ln1_g{li}"), bsl(f"ln1_b{li}"))

        # ---- FFN ----
        ff = dense(h, wsl(f"w1{li}", D), bsl(f"b1{li}"))
        # TODO(synk): PyTorch/HF default is exact erf-GELU; tanh approximation is
        #             used for guaranteed Mosaic lowering (synthetic weights, no parity need).
        ff = jax.nn.gelu(ff, approximate=True)
        ff = dense(ff, wsl(f"w2{li}", FF), bsl(f"b2{li}"))
        h = ln(h + ff, bsl(f"ln2_g{li}"), bsl(f"ln2_b{li}"))

    # --- pooler: CLS token (row 0 of this sequence) -> dense -> tanh
    cls = h[0:1, :]                                                      # (1, D)
    pooled = jnp.tanh(dense(cls, wsl("pool_w", D), bsl("pool_b")))

    # --- CLAP text_projection (Linear -> ReLU -> Linear) + F.normalize
    t = jax.nn.relu(dense(pooled, wsl("proj1_w", D), bsl("proj1_b")))
    t = dense(t, wsl("proj2_w", P), bsl("proj2_b"))
    t = t * jax.lax.rsqrt(jnp.sum(t * t, axis=-1, keepdims=True) + 1e-12)
    o_ref[0, :, :] = t                                                   # (1, P)


# ----------------------------- parameters ------------------------------------
def init_params(key):
    keys = jax.random.split(key, 6 + NLAYERS)

    def dense_w(k, fin, fout):
        return jax.random.normal(k, (fin, fout), jnp.float32) / math.sqrt(fin)

    w_slab = jnp.zeros((W_ROWS, W_COLS), jnp.float32)
    b_slab = jnp.zeros((1, B_COLS), jnp.float32)

    def put_w(slab, name, w):
        c, n = W_OFF[name]
        assert w.shape[1] == n
        return slab.at[0:w.shape[0], c:c + n].set(w)

    def put_b(slab, name, b):
        c, n = B_OFF[name]
        b = b.reshape(1, -1)
        assert b.shape[1] == n
        return slab.at[0:1, c:c + n].set(b)

    scale = 1.0 / math.sqrt(HD)

    w_slab = put_w(w_slab, "emb", 0.02 * jax.random.normal(keys[0], (V, D), jnp.float32))
    b_slab = put_b(b_slab, "emb_ln_g", jnp.ones((D,), jnp.float32))
    b_slab = put_b(b_slab, "emb_ln_b", jnp.zeros((D,), jnp.float32))

    for li in range(NLAYERS):
        lk = jax.random.split(keys[2 + li], 4)
        wqkv = dense_w(lk[0], D, 3 * D)
        # fold the 1/sqrt(head_dim) attention scale into the Q projection (zero-cost;
        # the Q bias slice would be scaled too, but it is initialized to zero).
        wqkv = wqkv.at[:, 0:D].multiply(scale)
        w_slab = put_w(w_slab, f"wqkv{li}", wqkv)
        b_slab = put_b(b_slab, f"bqkv{li}", jnp.zeros((3 * D,), jnp.float32))
        w_slab = put_w(w_slab, f"wo{li}", dense_w(lk[1], D, D))
        b_slab = put_b(b_slab, f"bo{li}", jnp.zeros((D,), jnp.float32))
        b_slab = put_b(b_slab, f"ln1_g{li}", jnp.ones((D,), jnp.float32))
        b_slab = put_b(b_slab, f"ln1_b{li}", jnp.zeros((D,), jnp.float32))
        w_slab = put_w(w_slab, f"w1{li}", dense_w(lk[2], D, FF))
        b_slab = put_b(b_slab, f"b1{li}", jnp.zeros((FF,), jnp.float32))
        w_slab = put_w(w_slab, f"w2{li}", dense_w(lk[3], FF, D))
        b_slab = put_b(b_slab, f"b2{li}", jnp.zeros((D,), jnp.float32))
        b_slab = put_b(b_slab, f"ln2_g{li}", jnp.ones((D,), jnp.float32))
        b_slab = put_b(b_slab, f"ln2_b{li}", jnp.zeros((D,), jnp.float32))

    w_slab = put_w(w_slab, "pool_w", dense_w(keys[2 + NLAYERS], D, D))
    b_slab = put_b(b_slab, "pool_b", jnp.zeros((D,), jnp.float32))
    w_slab = put_w(w_slab, "proj1_w", dense_w(keys[3 + NLAYERS], D, P))
    b_slab = put_b(b_slab, "proj1_b", jnp.zeros((P,), jnp.float32))
    w_slab = put_w(w_slab, "proj2_w", dense_w(keys[4 + NLAYERS], P, P))
    b_slab = put_b(b_slab, "proj2_b", jnp.zeros((P,), jnp.float32))

    return {
        "pos": 0.02 * jax.random.normal(keys[1], (S, D), jnp.float32),
        "w_slab": w_slab.astype(jnp.bfloat16),   # single bf16 weight slab
        "b_slab": b_slab,                        # single f32 bias/LN slab
    }


# ----------------------------- forward ---------------------------------------
def clap_text_conditioner_forward(token_ids, attention_mask, params):
    """token_ids: (B, S) int32, attention_mask: (B, S) in {0,1}.
    Returns [text_embedding (B, 1, P), ones(B, 1)] like CLAPTextConditioner.forward()."""
    ids = token_ids.reshape(B, S, 1).astype(jnp.int32)
    mask = attention_mask.reshape(B, 1, S).astype(jnp.float32)

    text_embedding = pl.pallas_call(
        _clap_text_kernel,
        out_shape=jax.ShapeDtypeStruct((B, 1, P), jnp.float32),
        grid=(B,),                                          # one sequence per program
        in_specs=[
            pl.BlockSpec((1, S, 1), lambda b: (b, 0, 0)),   # token ids
            pl.BlockSpec((1, 1, S), lambda b: (b, 0, 0)),   # attention mask
            pl.BlockSpec((S, D), lambda b: (0, 0)),         # position embeddings
            pl.BlockSpec((W_ROWS, W_COLS), lambda b: (0, 0)),   # packed bf16 weights
            pl.BlockSpec((1, B_COLS), lambda b: (0, 0)),        # packed f32 bias/LN
        ],
        out_specs=pl.BlockSpec((1, 1, P), lambda b: (b, 0, 0)),
        compiler_params=pltpu.CompilerParams(dimension_semantics=("parallel",)),
    )(ids, mask, params["pos"], params["w_slab"], params["b_slab"])

    # text_embedding is already (B, 1, P) == unsqueeze(1); proj_out is nn.Identity here
    return [text_embedding, jnp.ones((B, 1), jnp.float32)]


# ----------------------------- main -------------------------------------------
if __name__ == "__main__":
    key = jax.random.PRNGKey(0)
    k_ids, k_params = jax.random.split(key)

    token_ids = jax.random.randint(k_ids, (B, S), 0, V, dtype=jnp.int32)
    token_ids = token_ids.at[:, 0].set(0)          # CLS-like token at position 0
    attention_mask = jnp.array([[1] * S, [1] * (S - 2) + [0, 0]], jnp.float32)
    params = init_params(k_params)

    out = jax.jit(clap_text_conditioner_forward)(token_ids, attention_mask, params)
    text_embedding, out_mask = out
    jax.block_until_ready(text_embedding)
    jax.block_until_ready(out_mask)

    assert text_embedding.shape == (B, 1, P), text_embedding.shape
    assert out_mask.shape == (B, 1), out_mask.shape
    assert bool(jnp.all(jnp.isfinite(text_embedding)))
    norms = jnp.linalg.norm(text_embedding[:, 0, :], axis=-1)      # F.normalize parity
    assert bool(jnp.all(jnp.abs(norms - 1.0) < 1e-3)), norms
    print("KERNEL_OK")
</pallas_src>

<mosaic_0001>
module attributes {stable_mosaic.version = 11 : i64} {
  func.func @_clap_text_kernel(%arg0: i32, %arg1: memref<1x8x1xi32, #tpu.memory_space<vmem>>, %arg2: memref<1x1x8xf32, #tpu.memory_space<vmem>>, %arg3: memref<8x128xf32, #tpu.memory_space<vmem>>, %arg4: memref<256x2304xbf16, #tpu.memory_space<vmem>>, %arg5: memref<1x3456xf32, #tpu.memory_space<vmem>>, %arg6: memref<1x1x128xf32, #tpu.memory_space<vmem>>) attributes {dimension_semantics = [#tpu.dimension_semantics<parallel>], iteration_bounds = array<i64: 2>, scalar_prefetch = 0 : i64, scratch_operands = 0 : i64, tpu.core_type = #tpu.core_type<tc>, window_params = [{transform_indices = @transform_0, window_bounds = array<i64: 1, 8, 1>}, {transform_indices = @transform_1, window_bounds = array<i64: 1, 1, 8>}, {pipeline_mode = #tpu.pipeline_mode<synchronous>, transform_indices = @transform_2, window_bounds = array<i64: 8, 128>}, {pipeline_mode = #tpu.pipeline_mode<synchronous>, transform_indices = @transform_3, window_bounds = array<i64: 256, 2304>}, {pipeline_mode = #tpu.pipeline_mode<synchronous>, transform_indices = @transform_4, window_bounds = array<i64: 1, 3456>}, {transform_indices = @transform_5, window_bounds = array<i64: 1, 1, 128>}]} {
    %c0 = arith.constant 0 : index
    %c0_0 = arith.constant 0 : index
    %c0_1 = arith.constant 0 : index
    %0 = vector.load %arg1[%c0, %c0_0, %c0_1] : memref<1x8x1xi32, #tpu.memory_space<vmem>>, vector<1x8x1xi32>
    %1 = vector.shape_cast %0 : vector<1x8x1xi32> to vector<8x1xi32>
    %c0_2 = arith.constant 0 : index
    %c0_3 = arith.constant 0 : index
    %c0_4 = arith.constant 0 : index
    %2 = vector.load %arg2[%c0_2, %c0_3, %c0_4] : memref<1x1x8xf32, #tpu.memory_space<vmem>>, vector<1x1x8xf32>
    %3 = vector.shape_cast %2 : vector<1x1x8xf32> to vector<1x8xf32>
    %4 = tpu.iota {dimensions = array<i32: 1>} : vector<8x128xi32>
    %5 = vector.broadcast %1 : vector<8x1xi32> to vector<8x128xi32>
    %6 = arith.cmpi eq, %4, %5 : vector<8x128xi32>
    %7 = arith.extui %6 : vector<8x128xi1> to vector<8x128xi32>
    %8 = arith.sitofp %7 : vector<8x128xi32> to vector<8x128xf32>
    %9 = arith.truncf %8 : vector<8x128xf32> to vector<8x128xbf16>
    %c0_5 = arith.constant 0 : index
    %c0_6 = arith.constant 0 : index
    %10 = vector.load %arg4[%c0_5, %c0_6] : memref<256x2304xbf16, #tpu.memory_space<vmem>>, vector<128x128xbf16>
    %cst = arith.constant dense<0.000000e+00> : vector<8x128xf32>
    %11 = tpu.matmul %9, %10, %cst {dimension_numbers = #tpu.dot_dimension_numbers<[1], [0], [0], [1], [0, 0, 1, 1], [], []>} : vector<8x128xbf16>, vector<128x128xbf16>, vector<8x128xf32> -> vector<8x128xf32>
    %c0_7 = arith.constant 0 : index
    %c0_8 = arith.constant 0 : index
    %12 = vector.load %arg3[%c0_7, %c0_8] : memref<8x128xf32, #tpu.memory_space<vmem>>, vector<8x128xf32>
    %13 = arith.addf %11, %12 : vector<8x128xf32>
    %c0_9 = arith.constant 0 : index
    %c0_10 = arith.constant 0 : index
    %14 = vector.load %arg5[%c0_9, %c0_10] : memref<1x3456xf32, #tpu.memory_space<vmem>>, vector<1x128xf32>
    %c0_11 = arith.constant 0 : index
    %c128 = arith.constant 128 : index
    %15 = vector.load %arg5[%c0_11, %c128] : memref<1x3456xf32, #tpu.memory_space<vmem>>, vector<1x128xf32>
    %cst_12 = arith.constant dense<0.000000e+00> : vector<8xf32>
    %16 = vector.multi_reduction <add>, %13, %cst_12 [1] : vector<8x128xf32> to vector<8xf32>
    %17 = vector.shape_cast %16 : vector<8xf32> to vector<8x1xf32>
    %cst_13 = arith.constant 1.280000e+02 : f32
    %18 = vector.broadcast %cst_13 : f32 to vector<8x1xf32>
    %19 = arith.divf %17, %18 : vector<8x1xf32>
    %20 = arith.mulf %13, %13 : vector<8x128xf32>
    %cst_14 = arith.constant dense<0.000000e+00> : vector<8xf32>
    %21 = vector.multi_reduction <add>, %20, %cst_14 [1] : vector<8x128xf32> to vector<8xf32>
    %22 = vector.shape_cast %21 : vector<8xf32> to vector<8x1xf32>
    %cst_15 = arith.constant 1.280000e+02 : f32
    %23 = vector.broadcast %cst_15 : f32 to vector<8x1xf32>
    %24 = arith.divf %22, %23 : vector<8x1xf32>
    %25 = arith.mulf %19, %19 : vector<8x1xf32>
    %26 = arith.subf %24, %25 : vector<8x1xf32>
    %27 = vector.broadcast %19 : vector<8x1xf32> to vector<8x128xf32>
    %28 = arith.subf %13, %27 : vector<8x128xf32>
    %cst_16 = arith.constant 9.99999974E-6 : f32
    %29 = vector.broadcast %cst_16 : f32 to vector<8x1xf32>
    %30 = arith.addf %26, %29 : vector<8x1xf32>
    %31 = math.rsqrt %30 : vector<8x1xf32>
    %32 = vector.broadcast %31 : vector<8x1xf32> to vector<8x128xf32>
    %33 = arith.mulf %28, %32 : vector<8x128xf32>
    %34 = vector.broadcast %14 : vector<1x128xf32> to vector<8x128xf32>
    %35 = arith.mulf %33, %34 : vector<8x128xf32>
    %36 = vector.broadcast %15 : vector<1x128xf32> to vector<8x128xf32>
    %37 = arith.addf %35, %36 : vector<8x128xf32>
    %cst_17 = arith.constant 5.000000e-01 : f32
    %38 = vector.broadcast %cst_17 : f32 to vector<1x8xf32>
    %39 = arith.cmpf ogt, %3, %38 : vector<1x8xf32>
    %cst_18 = arith.constant 0.000000e+00 : f32
    %cst_19 = arith.constant -1.000000e+09 : f32
    %40 = vector.broadcast %cst_18 : f32 to vector<1x8xf32>
    %41 = vector.broadcast %cst_19 : f32 to vector<1x8xf32>
    %42 = arith.select %39, %40, %41 : vector<1x8xi1>, vector<1x8xf32>
    %c0_20 = arith.constant 0 : index
    %c128_21 = arith.constant 128 : index
    %43 = vector.load %arg4[%c0_20, %c128_21] : memref<256x2304xbf16, #tpu.memory_space<vmem>>, vector<128x384xbf16>
    %c0_22 = arith.constant 0 : index
    %c256 = arith.constant 256 : index
    %44 = vector.load %arg5[%c0_22, %c256] : memref<1x3456xf32, #tpu.memory_space<vmem>>, vector<1x384xf32>
    %45 = arith.truncf %37 : vector<8x128xf32> to vector<8x128xbf16>
    %cst_23 = arith.constant dense<0.000000e+00> : vector<8x384xf32>
    %46 = tpu.matmul %45, %43, %cst_23 {dimension_numbers = #tpu.dot_dimension_numbers<[1], [0], [0], [1], [0, 0, 1, 1], [], []>} : vector<8x128xbf16>, vector<128x384xbf16>, vector<8x384xf32> -> vector<8x384xf32>
    %47 = vector.broadcast %44 : vector<1x384xf32> to vector<8x384xf32>
    %48 = arith.addf %46, %47 : vector<8x384xf32>
    %49 = vector.extract_strided_slice %48 {offsets = [0, 0], sizes = [8, 128], strides = [1, 1]} : vector<8x384xf32> to vector<8x128xf32>
    %50 = vector.extract_strided_slice %48 {offsets = [0, 128], sizes = [8, 128], strides = [1, 1]} : vector<8x384xf32> to vector<8x128xf32>
    %51 = vector.extract_strided_slice %48 {offsets = [0, 256], sizes = [8, 128], strides = [1, 1]} : vector<8x384xf32> to vector<8x128xf32>
    %52 = vector.extract_strided_slice %49 {offsets = [0, 0], sizes = [8, 32], strides = [1, 1]} : vector<8x128xf32> to vector<8x32xf32>
    %53 = arith.truncf %52 : vector<8x32xf32> to vector<8x32xbf16>
    %54 = vector.extract_strided_slice %50 {offsets = [0, 0], sizes = [8, 32], strides = [1, 1]} : vector<8x128xf32> to vector<8x32xf32>
    %55 = arith.truncf %54 : vector<8x32xf32> to vector<8x32xbf16>
    %56 = vector.extract_strided_slice %51 {offsets = [0, 0], sizes = [8, 32], strides = [1, 1]} : vector<8x128xf32> to vector<8x32xf32>
    %57 = arith.truncf %56 : vector<8x32xf32> to vector<8x32xbf16>
    %cst_24 = arith.constant dense<0.000000e+00> : vector<8x8xf32>
    %58 = tpu.matmul %53, %55, %cst_24 {dimension_numbers = #tpu.dot_dimension_numbers<[1], [1], [0], [0], [0, 0, 1, 0], [], []>} : vector<8x32xbf16>, vector<8x32xbf16>, vector<8x8xf32> -> vector<8x8xf32>
    %59 = vector.broadcast %42 : vector<1x8xf32> to vector<8x8xf32>
    %60 = arith.addf %58, %59 : vector<8x8xf32>
    %cst_25 = arith.constant dense<0xFF800000> : vector<8xf32>
    %61 = vector.multi_reduction <maximumf>, %60, %cst_25 [1] : vector<8x8xf32> to vector<8xf32>
    %62 = vector.shape_cast %61 : vector<8xf32> to vector<8x1xf32>
    %63 = vector.broadcast %62 : vector<8x1xf32> to vector<8x8xf32>
    %64 = arith.subf %60, %63 : vector<8x8xf32>
    %65 = math.exp %64 : vector<8x8xf32>
    %cst_26 = arith.constant dense<0.000000e+00> : vector<8xf32>
    %66 = vector.multi_reduction <add>, %65, %cst_26 [1] : vector<8x8xf32> to vector<8xf32>
    %67 = vector.shape_cast %66 : vector<8xf32> to vector<8x1xf32>
    %68 = arith.truncf %65 : vector<8x8xf32> to vector<8x8xbf16>
    %cst_27 = arith.constant dense<0.000000e+00> : vector<8x32xf32>
    %69 = tpu.matmul %68, %57, %cst_27 {dimension_numbers = #tpu.dot_dimension_numbers<[1], [0], [0], [1], [0, 0, 1, 1], [], []>} : vector<8x8xbf16>, vector<8x32xbf16>, vector<8x32xf32> -> vector<8x32xf32>
    %70 = vector.broadcast %67 : vector<8x1xf32> to vector<8x32xf32>
    %71 = arith.divf %69, %70 : vector<8x32xf32>
    %72 = vector.extract_strided_slice %49 {offsets = [0, 32], sizes = [8, 32], strides = [1, 1]} : vector<8x128xf32> to vector<8x32xf32>
    %73 = arith.truncf %72 : vector<8x32xf32> to vector<8x32xbf16>
    %74 = vector.extract_strided_slice %50 {offsets = [0, 32], sizes = [8, 32], strides = [1, 1]} : vector<8x128xf32> to vector<8x32xf32>
    %75 = arith.truncf %74 : vector<8x32xf32> to vector<8x32xbf16>
    %76 = vector.extract_strided_slice %51 {offsets = [0, 32], sizes = [8, 32], strides = [1, 1]} : vector<8x128xf32> to vector<8x32xf32>
    %77 = arith.truncf %76 : vector<8x32xf32> to vector<8x32xbf16>
    %cst_28 = arith.constant dense<0.000000e+00> : vector<8x8xf32>
    %78 = tpu.matmul %73, %75, %cst_28 {dimension_numbers = #tpu.dot_dimension_numbers<[1], [1], [0], [0], [0, 0, 1, 0], [], []>} : vector<8x32xbf16>, vector<8x32xbf16>, vector<8x8xf32> -> vector<8x8xf32>
    %79 = vector.broadcast %42 : vector<1x8xf32> to vector<8x8xf32>
    %80 = arith.addf %78, %79 : vector<8x8xf32>
    %cst_29 = arith.constant dense<0xFF800000> : vector<8xf32>
    %81 = vector.multi_reduction <maximumf>, %80, %cst_29 [1] : vector<8x8xf32> to vector<8xf32>
    %82 = vector.shape_cast %81 : vector<8xf32> to vector<8x1xf32>
    %83 = vector.broadcast %82 : vector<8x1xf32> to vector<8x8xf32>
    %84 = arith.subf %80, %83 : vector<8x8xf32>
    %85 = math.exp %84 : vector<8x8xf32>
    %cst_30 = arith.constant dense<0.000000e+00> : vector<8xf32>
    %86 = vector.multi_reduction <add>, %85, %cst_30 [1] : vector<8x8xf32> to vector<8xf32>
    %87 = vector.shape_cast %86 : vector<8xf32> to vector<8x1xf32>
    %88 = arith.truncf %85 : vector<8x8xf32> to vector<8x8xbf16>
    %cst_31 = arith.constant dense<0.000000e+00> : vector<8x32xf32>
    %89 = tpu.matmul %88, %77, %cst_31 {dimension_numbers = #tpu.dot_dimension_numbers<[1], [0], [0], [1], [0, 0, 1, 1], [], []>} : vector<8x8xbf16>, vector<8x32xbf16>, vector<8x32xf32> -> vector<8x32xf32>
    %90 = vector.broadcast %87 : vector<8x1xf32> to vector<8x32xf32>
    %91 = arith.divf %89, %90 : vector<8x32xf32>
    %92 = vector.extract_strided_slice %49 {offsets = [0, 64], sizes = [8, 32], strides = [1, 1]} : vector<8x128xf32> to vector<8x32xf32>
    %93 = arith.truncf %92 : vector<8x32xf32> to vector<8x32xbf16>
    %94 = vector.extract_strided_slice %50 {offsets = [0, 64], sizes = [8, 32], strides = [1, 1]} : vector<8x128xf32> to vector<8x32xf32>
    %95 = arith.truncf %94 : vector<8x32xf32> to vector<8x32xbf16>
    %96 = vector.extract_strided_slice %51 {offsets = [0, 64], sizes = [8, 32], strides = [1, 1]} : vector<8x128xf32> to vector<8x32xf32>
    %97 = arith.truncf %96 : vector<8x32xf32> to vector<8x32xbf16>
    %cst_32 = arith.constant dense<0.000000e+00> : vector<8x8xf32>
    %98 = tpu.matmul %93, %95, %cst_32 {dimension_numbers = #tpu.dot_dimension_numbers<[1], [1], [0], [0], [0, 0, 1, 0], [], []>} : vector<8x32xbf16>, vector<8x32xbf16>, vector<8x8xf32> -> vector<8x8xf32>
    %99 = vector.broadcast %42 : vector<1x8xf32> to vector<8x8xf32>
    %100 = arith.addf %98, %99 : vector<8x8xf32>
    %cst_33 = arith.constant dense<0xFF800000> : vector<8xf32>
    %101 = vector.multi_reduction <maximumf>, %100, %cst_33 [1] : vector<8x8xf32> to vector<8xf32>
    %102 = vector.shape_cast %101 : vector<8xf32> to vector<8x1xf32>
    %103 = vector.broadcast %102 : vector<8x1xf32> to vector<8x8xf32>
    %104 = arith.subf %100, %103 : vector<8x8xf32>
    %105 = math.exp %104 : vector<8x8xf32>
    %cst_34 = arith.constant dense<0.000000e+00> : vector<8xf32>
    %106 = vector.multi_reduction <add>, %105, %cst_34 [1] : vector<8x8xf32> to vector<8xf32>
    %107 = vector.shape_cast %106 : vector<8xf32> to vector<8x1xf32>
    %108 = arith.truncf %105 : vector<8x8xf32> to vector<8x8xbf16>
    %cst_35 = arith.constant dense<0.000000e+00> : vector<8x32xf32>
    %109 = tpu.matmul %108, %97, %cst_35 {dimension_numbers = #tpu.dot_dimension_numbers<[1], [0], [0], [1], [0, 0, 1, 1], [], []>} : vector<8x8xbf16>, vector<8x32xbf16>, vector<8x32xf32> -> vector<8x32xf32>
    %110 = vector.broadcast %107 : vector<8x1xf32> to vector<8x32xf32>
    %111 = arith.divf %109, %110 : vector<8x32xf32>
    %112 = vector.extract_strided_slice %49 {offsets = [0, 96], sizes = [8, 32], strides = [1, 1]} : vector<8x128xf32> to vector<8x32xf32>
    %113 = arith.truncf %112 : vector<8x32xf32> to vector<8x32xbf16>
    %114 = vector.extract_strided_slice %50 {offsets = [0, 96], sizes = [8, 32], strides = [1, 1]} : vector<8x128xf32> to vector<8x32xf32>
    %115 = arith.truncf %114 : vector<8x32xf32> to vector<8x32xbf16>
    %116 = vector.extract_strided_slice %51 {offsets = [0, 96], sizes = [8, 32], strides = [1, 1]} : vector<8x128xf32> to vector<8x32xf32>
    %117 = arith.truncf %116 : vector<8x32xf32> to vector<8x32xbf16>
    %cst_36 = arith.constant dense<0.000000e+00> : vector<8x8xf32>
    %118 = tpu.matmul %113, %115, %cst_36 {dimension_numbers = #tpu.dot_dimension_numbers<[1], [1], [0], [0], [0, 0, 1, 0], [], []>} : vector<8x32xbf16>, vector<8x32xbf16>, vector<8x8xf32> -> vector<8x8xf32>
    %119 = vector.broadcast %42 : vector<1x8xf32> to vector<8x8xf32>
    %120 = arith.addf %118, %119 : vector<8x8xf32>
    %cst_37 = arith.constant dense<0xFF800000> : vector<8xf32>
    %121 = vector.multi_reduction <maximumf>, %120, %cst_37 [1] : vector<8x8xf32> to vector<8xf32>
    %122 = vector.shape_cast %121 : vector<8xf32> to vector<8x1xf32>
    %123 = vector.broadcast %122 : vector<8x1xf32> to vector<8x8xf32>
    %124 = arith.subf %120, %123 : vector<8x8xf32>
    %125 = math.exp %124 : vector<8x8xf32>
    %cst_38 = arith.constant dense<0.000000e+00> : vector<8xf32>
    %126 = vector.multi_reduction <add>, %125, %cst_38 [1] : vector<8x8xf32> to vector<8xf32>
    %127 = vector.shape_cast %126 : vector<8xf32> to vector<8x1xf32>
    %128 = arith.truncf %125 : vector<8x8xf32> to vector<8x8xbf16>
    %cst_39 = arith.constant dense<0.000000e+00> : vector<8x32xf32>
    %129 = tpu.matmul %128, %117, %cst_39 {dimension_numbers = #tpu.dot_dimension_numbers<[1], [0], [0], [1], [0, 0, 1, 1], [], []>} : vector<8x8xbf16>, vector<8x32xbf16>, vector<8x32xf32> -> vector<8x32xf32>
    %130 = vector.broadcast %127 : vector<8x1xf32> to vector<8x32xf32>
    %131 = arith.divf %129, %130 : vector<8x32xf32>
    %132 = tpu.concatenate %71, %91, %111, %131 in 1 : vector<8x32xf32>, vector<8x32xf32>, vector<8x32xf32>, vector<8x32xf32> -> vector<8x128xf32>
    %c0_40 = arith.constant 0 : index
    %c512 = arith.constant 512 : index
    %133 = vector.load %arg4[%c0_40, %c512] : memref<256x2304xbf16, #tpu.memory_space<vmem>>, vector<128x128xbf16>
    %c0_41 = arith.constant 0 : index
    %c640 = arith.constant 640 : index
    %134 = vector.load %arg5[%c0_41, %c640] : memref<1x3456xf32, #tpu.memory_space<vmem>>, vector<1x128xf32>
    %135 = arith.truncf %132 : vector<8x128xf32> to vector<8x128xbf16>
    %cst_42 = arith.constant dense<0.000000e+00> : vector<8x128xf32>
    %136 = tpu.matmul %135, %133, %cst_42 {dimension_numbers = #tpu.dot_dimension_numbers<[1], [0], [0], [1], [0, 0, 1, 1], [], []>} : vector<8x128xbf16>, vector<128x128xbf16>, vector<8x128xf32> -> vector<8x128xf32>
    %137 = vector.broadcast %134 : vector<1x128xf32> to vector<8x128xf32>
    %138 = arith.addf %136, %137 : vector<8x128xf32>
    %139 = arith.addf %37, %138 : vector<8x128xf32>
    %c0_43 = arith.constant 0 : index
    %c768 = arith.constant 768 : index
    %140 = vector.load %arg5[%c0_43, %c768] : memref<1x3456xf32, #tpu.memory_space<vmem>>, vector<1x128xf32>
    %c0_44 = arith.constant 0 : index
    %c896 = arith.constant 896 : index
    %141 = vector.load %arg5[%c0_44, %c896] : memref<1x3456xf32, #tpu.memory_space<vmem>>, vector<1x128xf32>
    %cst_45 = arith.constant dense<0.000000e+00> : vector<8xf32>
    %142 = vector.multi_reduction <add>, %139, %cst_45 [1] : vector<8x128xf32> to vector<8xf32>
    %143 = vector.shape_cast %142 : vector<8xf32> to vector<8x1xf32>
    %cst_46 = arith.constant 1.280000e+02 : f32
    %144 = vector.broadcast %cst_46 : f32 to vector<8x1xf32>
    %145 = arith.divf %143, %144 : vector<8x1xf32>
    %146 = arith.mulf %139, %139 : vector<8x128xf32>
    %cst_47 = arith.constant dense<0.000000e+00> : vector<8xf32>
    %147 = vector.multi_reduction <add>, %146, %cst_47 [1] : vector<8x128xf32> to vector<8xf32>
    %148 = vector.shape_cast %147 : vector<8xf32> to vector<8x1xf32>
    %cst_48 = arith.constant 1.280000e+02 : f32
    %149 = vector.broadcast %cst_48 : f32 to vector<8x1xf32>
    %150 = arith.divf %148, %149 : vector<8x1xf32>
    %151 = arith.mulf %145, %145 : vector<8x1xf32>
    %152 = arith.subf %150, %151 : vector<8x1xf32>
    %153 = vector.broadcast %145 : vector<8x1xf32> to vector<8x128xf32>
    %154 = arith.subf %139, %153 : vector<8x128xf32>
    %cst_49 = arith.constant 9.99999974E-6 : f32
    %155 = vector.broadcast %cst_49 : f32 to vector<8x1xf32>
    %156 = arith.addf %152, %155 : vector<8x1xf32>
    %157 = math.rsqrt %156 : vector<8x1xf32>
    %158 = vector.broadcast %157 : vector<8x1xf32> to vector<8x128xf32>
    %159 = arith.mulf %154, %158 : vector<8x128xf32>
    %160 = vector.broadcast %140 : vector<1x128xf32> to vector<8x128xf32>
    %161 = arith.mulf %159, %160 : vector<8x128xf32>
    %162 = vector.broadcast %141 : vector<1x128xf32> to vector<8x128xf32>
    %163 = arith.addf %161, %162 : vector<8x128xf32>
    %c0_50 = arith.constant 0 : index
    %c640_51 = arith.constant 640 : index
    %164 = vector.load %arg4[%c0_50, %c640_51] : memref<256x2304xbf16, #tpu.memory_space<vmem>>, vector<128x256xbf16>
    %c0_52 = arith.constant 0 : index
    %c1024 = arith.constant 1024 : index
    %165 = vector.load %arg5[%c0_52, %c1024] : memref<1x3456xf32, #tpu.memory_space<vmem>>, vector<1x256xf32>
    %166 = arith.truncf %163 : vector<8x128xf32> to vector<8x128xbf16>
    %cst_53 = arith.constant dense<0.000000e+00> : vector<8x256xf32>
    %167 = tpu.matmul %166, %164, %cst_53 {dimension_numbers = #tpu.dot_dimension_numbers<[1], [0], [0], [1], [0, 0, 1, 1], [], []>} : vector<8x128xbf16>, vector<128x256xbf16>, vector<8x256xf32> -> vector<8x256xf32>
    %168 = vector.broadcast %165 : vector<1x256xf32> to vector<8x256xf32>
    %169 = arith.addf %167, %168 : vector<8x256xf32>
    %170 = arith.mulf %169, %169 : vector<8x256xf32>
    %171 = arith.mulf %169, %170 : vector<8x256xf32>
    %cst_54 = arith.constant 4.471500e-02 : f32
    %172 = vector.broadcast %cst_54 : f32 to vector<8x256xf32>
    %173 = arith.mulf %172, %171 : vector<8x256xf32>
    %174 = arith.addf %169, %173 : vector<8x256xf32>
    %cst_55 = arith.constant 0.797884583 : f32
    %175 = vector.broadcast %cst_55 : f32 to vector<8x256xf32>
    %176 = arith.mulf %175, %174 : vector<8x256xf32>
    %177 = math.tanh %176 : vector<8x256xf32>
    %cst_56 = arith.constant 1.000000e+00 : f32
    %178 = vector.broadcast %cst_56 : f32 to vector<8x256xf32>
    %179 = arith.addf %178, %177 : vector<8x256xf32>
    %cst_57 = arith.constant 5.000000e-01 : f32
    %180 = vector.broadcast %cst_57 : f32 to vector<8x256xf32>
    %181 = arith.mulf %180, %179 : vector<8x256xf32>
    %182 = arith.mulf %169, %181 : vector<8x256xf32>
    %c0_58 = arith.constant 0 : index
    %c896_59 = arith.constant 896 : index
    %183 = vector.load %arg4[%c0_58, %c896_59] : memref<256x2304xbf16, #tpu.memory_space<vmem>>, vector<256x128xbf16>
    %c0_60 = arith.constant 0 : index
    %c1280 = arith.constant 1280 : index
    %184 = vector.load %arg5[%c0_60, %c1280] : memref<1x3456xf32, #tpu.memory_space<vmem>>, vector<1x128xf32>
    %185 = arith.truncf %182 : vector<8x256xf32> to vector<8x256xbf16>
    %cst_61 = arith.constant dense<0.000000e+00> : vector<8x128xf32>
    %186 = tpu.matmul %185, %183, %cst_61 {dimension_numbers = #tpu.dot_dimension_numbers<[1], [0], [0], [1], [0, 0, 1, 1], [], []>} : vector<8x256xbf16>, vector<256x128xbf16>, vector<8x128xf32> -> vector<8x128xf32>
    %187 = vector.broadcast %184 : vector<1x128xf32> to vector<8x128xf32>
    %188 = arith.addf %186, %187 : vector<8x128xf32>
    %189 = arith.addf %163, %188 : vector<8x128xf32>
    %c0_62 = arith.constant 0 : index
    %c1408 = arith.constant 1408 : index
    %190 = vector.load %arg5[%c0_62, %c1408] : memref<1x3456xf32, #tpu.memory_space<vmem>>, vector<1x128xf32>
    %c0_63 = arith.constant 0 : index
    %c1536 = arith.constant 1536 : index
    %191 = vector.load %arg5[%c0_63, %c1536] : memref<1x3456xf32, #tpu.memory_space<vmem>>, vector<1x128xf32>
    %cst_64 = arith.constant dense<0.000000e+00> : vector<8xf32>
    %192 = vector.multi_reduction <add>, %189, %cst_64 [1] : vector<8x128xf32> to vector<8xf32>
    %193 = vector.shape_cast %192 : vector<8xf32> to vector<8x1xf32>
    %cst_65 = arith.constant 1.280000e+02 : f32
    %194 = vector.broadcast %cst_65 : f32 to vector<8x1xf32>
    %195 = arith.divf %193, %194 : vector<8x1xf32>
    %196 = arith.mulf %189, %189 : vector<8x128xf32>
    %cst_66 = arith.constant dense<0.000000e+00> : vector<8xf32>
    %197 = vector.multi_reduction <add>, %196, %cst_66 [1] : vector<8x128xf32> to vector<8xf32>
    %198 = vector.shape_cast %197 : vector<8xf32> to vector<8x1xf32>
    %cst_67 = arith.constant 1.280000e+02 : f32
    %199 = vector.broadcast %cst_67 : f32 to vector<8x1xf32>
    %200 = arith.divf %198, %199 : vector<8x1xf32>
    %201 = arith.mulf %195, %195 : vector<8x1xf32>
    %202 = arith.subf %200, %201 : vector<8x1xf32>
    %203 = vector.broadcast %195 : vector<8x1xf32> to vector<8x128xf32>
    %204 = arith.subf %189, %203 : vector<8x128xf32>
    %cst_68 = arith.constant 9.99999974E-6 : f32
    %205 = vector.broadcast %cst_68 : f32 to vector<8x1xf32>
    %206 = arith.addf %202, %205 : vector<8x1xf32>
    %207 = math.rsqrt %206 : vector<8x1xf32>
    %208 = vector.broadcast %207 : vector<8x1xf32> to vector<8x128xf32>
    %209 = arith.mulf %204, %208 : vector<8x128xf32>
    %210 = vector.broadcast %190 : vector<1x128xf32> to vector<8x128xf32>
    %211 = arith.mulf %209, %210 : vector<8x128xf32>
    %212 = vector.broadcast %191 : vector<1x128xf32> to vector<8x128xf32>
    %213 = arith.addf %211, %212 : vector<8x128xf32>
    %c0_69 = arith.constant 0 : index
    %c1024_70 = arith.constant 1024 : index
    %214 = vector.load %arg4[%c0_69, %c1024_70] : memref<256x2304xbf16, #tpu.memory_space<vmem>>, vector<128x384xbf16>
    %c0_71 = arith.constant 0 : index
    %c1664 = arith.constant 1664 : index
    %215 = vector.load %arg5[%c0_71, %c1664] : memref<1x3456xf32, #tpu.memory_space<vmem>>, vector<1x384xf32>
    %216 = arith.truncf %213 : vector<8x128xf32> to vector<8x128xbf16>
    %cst_72 = arith.constant dense<0.000000e+00> : vector<8x384xf32>
    %217 = tpu.matmul %216, %214, %cst_72 {dimension_numbers = #tpu.dot_dimension_numbers<[1], [0], [0], [1], [0, 0, 1, 1], [], []>} : vector<8x128xbf16>, vector<128x384xbf16>, vector<8x384xf32> -> vector<8x384xf32>
    %218 = vector.broadcast %215 : vector<1x384xf32> to vector<8x384xf32>
    %219 = arith.addf %217, %218 : vector<8x384xf32>
    %220 = vector.extract_strided_slice %219 {offsets = [0, 0], sizes = [8, 128], strides = [1, 1]} : vector<8x384xf32> to vector<8x128xf32>
    %221 = vector.extract_strided_slice %219 {offsets = [0, 128], sizes = [8, 128], strides = [1, 1]} : vector<8x384xf32> to vector<8x128xf32>
    %222 = vector.extract_strided_slice %219 {offsets = [0, 256], sizes = [8, 128], strides = [1, 1]} : vector<8x384xf32> to vector<8x128xf32>
    %223 = vector.extract_strided_slice %220 {offsets = [0, 0], sizes = [8, 32], strides = [1, 1]} : vector<8x128xf32> to vector<8x32xf32>
    %224 = arith.truncf %223 : vector<8x32xf32> to vector<8x32xbf16>
    %225 = vector.extract_strided_slice %221 {offsets = [0, 0], sizes = [8, 32], strides = [1, 1]} : vector<8x128xf32> to vector<8x32xf32>
    %226 = arith.truncf %225 : vector<8x32xf32> to vector<8x32xbf16>
    %227 = vector.extract_strided_slice %222 {offsets = [0, 0], sizes = [8, 32], strides = [1, 1]} : vector<8x128xf32> to vector<8x32xf32>
    %228 = arith.truncf %227 : vector<8x32xf32> to vector<8x32xbf16>
    %cst_73 = arith.constant dense<0.000000e+00> : vector<8x8xf32>
    %229 = tpu.matmul %224, %226, %cst_73 {dimension_numbers = #tpu.dot_dimension_numbers<[1], [1], [0], [0], [0, 0, 1, 0], [], []>} : vector<8x32xbf16>, vector<8x32xbf16>, vector<8x8xf32> -> vector<8x8xf32>
    %230 = vector.broadcast %42 : vector<1x8xf32> to vector<8x8xf32>
    %231 = arith.addf %229, %230 : vector<8x8xf32>
    %cst_74 = arith.constant dense<0xFF800000> : vector<8xf32>
    %232 = vector.multi_reduction <maximumf>, %231, %cst_74 [1] : vector<8x8xf32> to vector<8xf32>
    %233 = vector.shape_cast %232 : vector<8xf32> to vector<8x1xf32>
    %234 = vector.broadcast %233 : vector<8x1xf32> to vector<8x8xf32>
    %235 = arith.subf %231, %234 : vector<8x8xf32>
    %236 = math.exp %235 : vector<8x8xf32>
    %cst_75 = arith.constant dense<0.000000e+00> : vector<8xf32>
    %237 = vector.multi_reduction <add>, %236, %cst_75 [1] : vector<8x8xf32> to vector<8xf32>
    %238 = vector.shape_cast %237 : vector<8xf32> to vector<8x1xf32>
    %239 = arith.truncf %236 : vector<8x8xf32> to vector<8x8xbf16>
    %cst_76 = arith.constant dense<0.000000e+00> : vector<8x32xf32>
    %240 = tpu.matmul %239, %228, %cst_76 {dimension_numbers = #tpu.dot_dimension_numbers<[1], [0], [0], [1], [0, 0, 1, 1], [], []>} : vector<8x8xbf16>, vector<8x32xbf16>, vector<8x32xf32> -> vector<8x32xf32>
    %241 = vector.broadcast %238 : vector<8x1xf32> to vector<8x32xf32>
    %242 = arith.divf %240, %241 : vector<8x32xf32>
    %243 = vector.extract_strided_slice %220 {offsets = [0, 32], sizes = [8, 32], strides = [1, 1]} : vector<8x128xf32> to vector<8x32xf32>
    %244 = arith.truncf %243 : vector<8x32xf32> to vector<8x32xbf16>
    %245 = vector.extract_strided_slice %221 {offsets = [0, 32], sizes = [8, 32], strides = [1, 1]} : vector<8x128xf32> to vector<8x32xf32>
    %246 = arith.truncf %245 : vector<8x32xf32> to vector<8x32xbf16>
    %247 = vector.extract_strided_slice %222 {offsets = [0, 32], sizes = [8, 32], strides = [1, 1]} : vector<8x128xf32> to vector<8x32xf32>
    %248 = arith.truncf %247 : vector<8x32xf32> to vector<8x32xbf16>
    %cst_77 = arith.constant dense<0.000000e+00> : vector<8x8xf32>
    %249 = tpu.matmul %244, %246, %cst_77 {dimension_numbers = #tpu.dot_dimension_numbers<[1], [1], [0], [0], [0, 0, 1, 0], [], []>} : vector<8x32xbf16>, vector<8x32xbf16>, vector<8x8xf32> -> vector<8x8xf32>
    %250 = vector.broadcast %42 : vector<1x8xf32> to vector<8x8xf32>
    %251 = arith.addf %249, %250 : vector<8x8xf32>
    %cst_78 = arith.constant dense<0xFF800000> : vector<8xf32>
    %252 = vector.multi_reduction <maximumf>, %251, %cst_78 [1] : vector<8x8xf32> to vector<8xf32>
    %253 = vector.shape_cast %252 : vector<8xf32> to vector<8x1xf32>
    %254 = vector.broadcast %253 : vector<8x1xf32> to vector<8x8xf32>
    %255 = arith.subf %251, %254 : vector<8x8xf32>
    %256 = math.exp %255 : vector<8x8xf32>
    %cst_79 = arith.constant dense<0.000000e+00> : vector<8xf32>
    %257 = vector.multi_reduction <add>, %256, %cst_79 [1] : vector<8x8xf32> to vector<8xf32>
    %258 = vector.shape_cast %257 : vector<8xf32> to vector<8x1xf32>
    %259 = arith.truncf %256 : vector<8x8xf32> to vector<8x8xbf16>
    %cst_80 = arith.constant dense<0.000000e+00> : vector<8x32xf32>
    %260 = tpu.matmul %259, %248, %cst_80 {dimension_numbers = #tpu.dot_dimension_numbers<[1], [0], [0], [1], [0, 0, 1, 1], [], []>} : vector<8x8xbf16>, vector<8x32xbf16>, vector<8x32xf32> -> vector<8x32xf32>
    %261 = vector.broadcast %258 : vector<8x1xf32> to vector<8x32xf32>
    %262 = arith.divf %260, %261 : vector<8x32xf32>
    %263 = vector.extract_strided_slice %220 {offsets = [0, 64], sizes = [8, 32], strides = [1, 1]} : vector<8x128xf32> to vector<8x32xf32>
    %264 = arith.truncf %263 : vector<8x32xf32> to vector<8x32xbf16>
    %265 = vector.extract_strided_slice %221 {offsets = [0, 64], sizes = [8, 32], strides = [1, 1]} : vector<8x128xf32> to vector<8x32xf32>
    %266 = arith.truncf %265 : vector<8x32xf32> to vector<8x32xbf16>
    %267 = vector.extract_strided_slice %222 {offsets = [0, 64], sizes = [8, 32], strides = [1, 1]} : vector<8x128xf32> to vector<8x32xf32>
    %268 = arith.truncf %267 : vector<8x32xf32> to vector<8x32xbf16>
    %cst_81 = arith.constant dense<0.000000e+00> : vector<8x8xf32>
    %269 = tpu.matmul %264, %266, %cst_81 {dimension_numbers = #tpu.dot_dimension_numbers<[1], [1], [0], [0], [0, 0, 1, 0], [], []>} : vector<8x32xbf16>, vector<8x32xbf16>, vector<8x8xf32> -> vector<8x8xf32>
    %270 = vector.broadcast %42 : vector<1x8xf32> to vector<8x8xf32>
    %271 = arith.addf %269, %270 : vector<8x8xf32>
    %cst_82 = arith.constant dense<0xFF800000> : vector<8xf32>
    %272 = vector.multi_reduction <maximumf>, %271, %cst_82 [1] : vector<8x8xf32> to vector<8xf32>
    %273 = vector.shape_cast %272 : vector<8xf32> to vector<8x1xf32>
    %274 = vector.broadcast %273 : vector<8x1xf32> to vector<8x8xf32>
    %275 = arith.subf %271, %274 : vector<8x8xf32>
    %276 = math.exp %275 : vector<8x8xf32>
    %cst_83 = arith.constant dense<0.000000e+00> : vector<8xf32>
    %277 = vector.multi_reduction <add>, %276, %cst_83 [1] : vector<8x8xf32> to vector<8xf32>
    %278 = vector.shape_cast %277 : vector<8xf32> to vector<8x1xf32>
    %279 = arith.truncf %276 : vector<8x8xf32> to vector<8x8xbf16>
    %cst_84 = arith.constant dense<0.000000e+00> : vector<8x32xf32>
    %280 = tpu.matmul %279, %268, %cst_84 {dimension_numbers = #tpu.dot_dimension_numbers<[1], [0], [0], [1], [0, 0, 1, 1], [], []>} : vector<8x8xbf16>, vector<8x32xbf16>, vector<8x32xf32> -> vector<8x32xf32>
    %281 = vector.broadcast %278 : vector<8x1xf32> to vector<8x32xf32>
    %282 = arith.divf %280, %281 : vector<8x32xf32>
    %283 = vector.extract_strided_slice %220 {offsets = [0, 96], sizes = [8, 32], strides = [1, 1]} : vector<8x128xf32> to vector<8x32xf32>
    %284 = arith.truncf %283 : vector<8x32xf32> to vector<8x32xbf16>
    %285 = vector.extract_strided_slice %221 {offsets = [0, 96], sizes = [8, 32], strides = [1, 1]} : vector<8x128xf32> to vector<8x32xf32>
    %286 = arith.truncf %285 : vector<8x32xf32> to vector<8x32xbf16>
    %287 = vector.extract_strided_slice %222 {offsets = [0, 96], sizes = [8, 32], strides = [1, 1]} : vector<8x128xf32> to vector<8x32xf32>
    %288 = arith.truncf %287 : vector<8x32xf32> to vector<8x32xbf16>
    %cst_85 = arith.constant dense<0.000000e+00> : vector<8x8xf32>
    %289 = tpu.matmul %284, %286, %cst_85 {dimension_numbers = #tpu.dot_dimension_numbers<[1], [1], [0], [0], [0, 0, 1, 0], [], []>} : vector<8x32xbf16>, vector<8x32xbf16>, vector<8x8xf32> -> vector<8x8xf32>
    %290 = vector.broadcast %42 : vector<1x8xf32> to vector<8x8xf32>
    %291 = arith.addf %289, %290 : vector<8x8xf32>
    %cst_86 = arith.constant dense<0xFF800000> : vector<8xf32>
    %292 = vector.multi_reduction <maximumf>, %291, %cst_86 [1] : vector<8x8xf32> to vector<8xf32>
    %293 = vector.shape_cast %292 : vector<8xf32> to vector<8x1xf32>
    %294 = vector.broadcast %293 : vector<8x1xf32> to vector<8x8xf32>
    %295 = arith.subf %291, %294 : vector<8x8xf32>
    %296 = math.exp %295 : vector<8x8xf32>
    %cst_87 = arith.constant dense<0.000000e+00> : vector<8xf32>
    %297 = vector.multi_reduction <add>, %296, %cst_87 [1] : vector<8x8xf32> to vector<8xf32>
    %298 = vector.shape_cast %297 : vector<8xf32> to vector<8x1xf32>
    %299 = arith.truncf %296 : vector<8x8xf32> to vector<8x8xbf16>
    %cst_88 = arith.constant dense<0.000000e+00> : vector<8x32xf32>
    %300 = tpu.matmul %299, %288, %cst_88 {dimension_numbers = #tpu.dot_dimension_numbers<[1], [0], [0], [1], [0, 0, 1, 1], [], []>} : vector<8x8xbf16>, vector<8x32xbf16>, vector<8x32xf32> -> vector<8x32xf32>
    %301 = vector.broadcast %298 : vector<8x1xf32> to vector<8x32xf32>
    %302 = arith.divf %300, %301 : vector<8x32xf32>
    %303 = tpu.concatenate %242, %262, %282, %302 in 1 : vector<8x32xf32>, vector<8x32xf32>, vector<8x32xf32>, vector<8x32xf32> -> vector<8x128xf32>
    %c0_89 = arith.constant 0 : index
    %c1408_90 = arith.constant 1408 : index
    %304 = vector.load %arg4[%c0_89, %c1408_90] : memref<256x2304xbf16, #tpu.memory_space<vmem>>, vector<128x128xbf16>
    %c0_91 = arith.constant 0 : index
    %c2048 = arith.constant 2048 : index
    %305 = vector.load %arg5[%c0_91, %c2048] : memref<1x3456xf32, #tpu.memory_space<vmem>>, vector<1x128xf32>
    %306 = arith.truncf %303 : vector<8x128xf32> to vector<8x128xbf16>
    %cst_92 = arith.constant dense<0.000000e+00> : vector<8x128xf32>
    %307 = tpu.matmul %306, %304, %cst_92 {dimension_numbers = #tpu.dot_dimension_numbers<[1], [0], [0], [1], [0, 0, 1, 1], [], []>} : vector<8x128xbf16>, vector<128x128xbf16>, vector<8x128xf32> -> vector<8x128xf32>
    %308 = vector.broadcast %305 : vector<1x128xf32> to vector<8x128xf32>
    %309 = arith.addf %307, %308 : vector<8x128xf32>
    %310 = arith.addf %213, %309 : vector<8x128xf32>
    %c0_93 = arith.constant 0 : index
    %c2176 = arith.constant 2176 : index
    %311 = vector.load %arg5[%c0_93, %c2176] : memref<1x3456xf32, #tpu.memory_space<vmem>>, vector<1x128xf32>
    %c0_94 = arith.constant 0 : index
    %c2304 = arith.constant 2304 : index
    %312 = vector.load %arg5[%c0_94, %c2304] : memref<1x3456xf32, #tpu.memory_space<vmem>>, vector<1x128xf32>
    %cst_95 = arith.constant dense<0.000000e+00> : vector<8xf32>
    %313 = vector.multi_reduction <add>, %310, %cst_95 [1] : vector<8x128xf32> to vector<8xf32>
    %314 = vector.shape_cast %313 : vector<8xf32> to vector<8x1xf32>
    %cst_96 = arith.constant 1.280000e+02 : f32
    %315 = vector.broadcast %cst_96 : f32 to vector<8x1xf32>
    %316 = arith.divf %314, %315 : vector<8x1xf32>
    %317 = arith.mulf %310, %310 : vector<8x128xf32>
    %cst_97 = arith.constant dense<0.000000e+00> : vector<8xf32>
    %318 = vector.multi_reduction <add>, %317, %cst_97 [1] : vector<8x128xf32> to vector<8xf32>
    %319 = vector.shape_cast %318 : vector<8xf32> to vector<8x1xf32>
    %cst_98 = arith.constant 1.280000e+02 : f32
    %320 = vector.broadcast %cst_98 : f32 to vector<8x1xf32>
    %321 = arith.divf %319, %320 : vector<8x1xf32>
    %322 = arith.mulf %316, %316 : vector<8x1xf32>
    %323 = arith.subf %321, %322 : vector<8x1xf32>
    %324 = vector.broadcast %316 : vector<8x1xf32> to vector<8x128xf32>
    %325 = arith.subf %310, %324 : vector<8x128xf32>
    %cst_99 = arith.constant 9.99999974E-6 : f32
    %326 = vector.broadcast %cst_99 : f32 to vector<8x1xf32>
    %327 = arith.addf %323, %326 : vector<8x1xf32>
    %328 = math.rsqrt %327 : vector<8x1xf32>
    %329 = vector.broadcast %328 : vector<8x1xf32> to vector<8x128xf32>
    %330 = arith.mulf %325, %329 : vector<8x128xf32>
    %331 = vector.broadcast %311 : vector<1x128xf32> to vector<8x128xf32>
    %332 = arith.mulf %330, %331 : vector<8x128xf32>
    %333 = vector.broadcast %312 : vector<1x128xf32> to vector<8x128xf32>
    %334 = arith.addf %332, %333 : vector<8x128xf32>
    %c0_100 = arith.constant 0 : index
    %c1536_101 = arith.constant 1536 : index
    %335 = vector.load %arg4[%c0_100, %c1536_101] : memref<256x2304xbf16, #tpu.memory_space<vmem>>, vector<128x256xbf16>
    %c0_102 = arith.constant 0 : index
    %c2432 = arith.constant 2432 : index
    %336 = vector.load %arg5[%c0_102, %c2432] : memref<1x3456xf32, #tpu.memory_space<vmem>>, vector<1x256xf32>
    %337 = arith.truncf %334 : vector<8x128xf32> to vector<8x128xbf16>
    %cst_103 = arith.constant dense<0.000000e+00> : vector<8x256xf32>
    %338 = tpu.matmul %337, %335, %cst_103 {dimension_numbers = #tpu.dot_dimension_numbers<[1], [0], [0], [1], [0, 0, 1, 1], [], []>} : vector<8x128xbf16>, vector<128x256xbf16>, vector<8x256xf32> -> vector<8x256xf32>
    %339 = vector.broadcast %336 : vector<1x256xf32> to vector<8x256xf32>
    %340 = arith.addf %338, %339 : vector<8x256xf32>
    %341 = arith.mulf %340, %340 : vector<8x256xf32>
    %342 = arith.mulf %340, %341 : vector<8x256xf32>
    %cst_104 = arith.constant 4.471500e-02 : f32
    %343 = vector.broadcast %cst_104 : f32 to vector<8x256xf32>
    %344 = arith.mulf %343, %342 : vector<8x256xf32>
    %345 = arith.addf %340, %344 : vector<8x256xf32>
    %cst_105 = arith.constant 0.797884583 : f32
    %346 = vector.broadcast %cst_105 : f32 to vector<8x256xf32>
    %347 = arith.mulf %346, %345 : vector<8x256xf32>
    %348 = math.tanh %347 : vector<8x256xf32>
    %cst_106 = arith.constant 1.000000e+00 : f32
    %349 = vector.broadcast %cst_106 : f32 to vector<8x256xf32>
    %350 = arith.addf %349, %348 : vector<8x256xf32>
    %cst_107 = arith.constant 5.000000e-01 : f32
    %351 = vector.broadcast %cst_107 : f32 to vector<8x256xf32>
    %352 = arith.mulf %351, %350 : vector<8x256xf32>
    %353 = arith.mulf %340, %352 : vector<8x256xf32>
    %c0_108 = arith.constant 0 : index
    %c1792 = arith.constant 1792 : index
    %354 = vector.load %arg4[%c0_108, %c1792] : memref<256x2304xbf16, #tpu.memory_space<vmem>>, vector<256x128xbf16>
    %c0_109 = arith.constant 0 : index
    %c2688 = arith.constant 2688 : index
    %355 = vector.load %arg5[%c0_109, %c2688] : memref<1x3456xf32, #tpu.memory_space<vmem>>, vector<1x128xf32>
    %356 = arith.truncf %353 : vector<8x256xf32> to vector<8x256xbf16>
    %cst_110 = arith.constant dense<0.000000e+00> : vector<8x128xf32>
    %357 = tpu.matmul %356, %354, %cst_110 {dimension_numbers = #tpu.dot_dimension_numbers<[1], [0], [0], [1], [0, 0, 1, 1], [], []>} : vector<8x256xbf16>, vector<256x128xbf16>, vector<8x128xf32> -> vector<8x128xf32>
    %358 = vector.broadcast %355 : vector<1x128xf32> to vector<8x128xf32>
    %359 = arith.addf %357, %358 : vector<8x128xf32>
    %360 = arith.addf %334, %359 : vector<8x128xf32>
    %c0_111 = arith.constant 0 : index
    %c2816 = arith.constant 2816 : index
    %361 = vector.load %arg5[%c0_111, %c2816] : memref<1x3456xf32, #tpu.memory_space<vmem>>, vector<1x128xf32>
    %c0_112 = arith.constant 0 : index
    %c2944 = arith.constant 2944 : index
    %362 = vector.load %arg5[%c0_112, %c2944] : memref<1x3456xf32, #tpu.memory_space<vmem>>, vector<1x128xf32>
    %cst_113 = arith.constant dense<0.000000e+00> : vector<8xf32>
    %363 = vector.multi_reduction <add>, %360, %cst_113 [1] : vector<8x128xf32> to vector<8xf32>
    %364 = vector.shape_cast %363 : vector<8xf32> to vector<8x1xf32>
    %cst_114 = arith.constant 1.280000e+02 : f32
    %365 = vector.broadcast %cst_114 : f32 to vector<8x1xf32>
    %366 = arith.divf %364, %365 : vector<8x1xf32>
    %367 = arith.mulf %360, %360 : vector<8x128xf32>
    %cst_115 = arith.constant dense<0.000000e+00> : vector<8xf32>
    %368 = vector.multi_reduction <add>, %367, %cst_115 [1] : vector<8x128xf32> to vector<8xf32>
    %369 = vector.shape_cast %368 : vector<8xf32> to vector<8x1xf32>
    %cst_116 = arith.constant 1.280000e+02 : f32
    %370 = vector.broadcast %cst_116 : f32 to vector<8x1xf32>
    %371 = arith.divf %369, %370 : vector<8x1xf32>
    %372 = arith.mulf %366, %366 : vector<8x1xf32>
    %373 = arith.subf %371, %372 : vector<8x1xf32>
    %374 = vector.broadcast %366 : vector<8x1xf32> to vector<8x128xf32>
    %375 = arith.subf %360, %374 : vector<8x128xf32>
    %cst_117 = arith.constant 9.99999974E-6 : f32
    %376 = vector.broadcast %cst_117 : f32 to vector<8x1xf32>
    %377 = arith.addf %373, %376 : vector<8x1xf32>
    %378 = math.rsqrt %377 : vector<8x1xf32>
    %379 = vector.broadcast %378 : vector<8x1xf32> to vector<8x128xf32>
    %380 = arith.mulf %375, %379 : vector<8x128xf32>
    %381 = vector.broadcast %361 : vector<1x128xf32> to vector<8x128xf32>
    %382 = arith.mulf %380, %381 : vector<8x128xf32>
    %383 = vector.broadcast %362 : vector<1x128xf32> to vector<8x128xf32>
    %384 = arith.addf %382, %383 : vector<8x128xf32>
    %385 = vector.extract_strided_slice %384 {offsets = [0, 0], sizes = [1, 128], strides = [1, 1]} : vector<8x128xf32> to vector<1x128xf32>
    %c0_118 = arith.constant 0 : index
    %c1920 = arith.constant 1920 : index
    %386 = vector.load %arg4[%c0_118, %c1920] : memref<256x2304xbf16, #tpu.memory_space<vmem>>, vector<128x128xbf16>
    %c0_119 = arith.constant 0 : index
    %c3072 = arith.constant 3072 : index
    %387 = vector.load %arg5[%c0_119, %c3072] : memref<1x3456xf32, #tpu.memory_space<vmem>>, vector<1x128xf32>
    %388 = arith.truncf %385 : vector<1x128xf32> to vector<1x128xbf16>
    %cst_120 = arith.constant dense<0.000000e+00> : vector<1x128xf32>
    %389 = tpu.matmul %388, %386, %cst_120 {dimension_numbers = #tpu.dot_dimension_numbers<[1], [0], [0], [1], [0, 0, 1, 1], [], []>} : vector<1x128xbf16>, vector<128x128xbf16>, vector<1x128xf32> -> vector<1x128xf32>
    %390 = arith.addf %389, %387 : vector<1x128xf32>
    %391 = math.tanh %390 : vector<1x128xf32>
    %c0_121 = arith.constant 0 : index
    %c2048_122 = arith.constant 2048 : index
    %392 = vector.load %arg4[%c0_121, %c2048_122] : memref<256x2304xbf16, #tpu.memory_space<vmem>>, vector<128x128xbf16>
    %c0_123 = arith.constant 0 : index
    %c3200 = arith.constant 3200 : index
    %393 = vector.load %arg5[%c0_123, %c3200] : memref<1x3456xf32, #tpu.memory_space<vmem>>, vector<1x128xf32>
    %394 = arith.truncf %391 : vector<1x128xf32> to vector<1x128xbf16>
    %cst_124 = arith.constant dense<0.000000e+00> : vector<1x128xf32>
    %395 = tpu.matmul %394, %392, %cst_124 {dimension_numbers = #tpu.dot_dimension_numbers<[1], [0], [0], [1], [0, 0, 1, 1], [], []>} : vector<1x128xbf16>, vector<128x128xbf16>, vector<1x128xf32> -> vector<1x128xf32>
    %396 = arith.addf %395, %393 : vector<1x128xf32>
    %cst_125 = arith.constant 0.000000e+00 : f32
    %397 = vector.broadcast %cst_125 : f32 to vector<1x128xf32>
    %398 = arith.maximumf %396, %397 : vector<1x128xf32>
    %c0_126 = arith.constant 0 : index
    %c2176_127 = arith.constant 2176 : index
    %399 = vector.load %arg4[%c0_126, %c2176_127] : memref<256x2304xbf16, #tpu.memory_space<vmem>>, vector<128x128xbf16>
    %c0_128 = arith.constant 0 : index
    %c3328 = arith.constant 3328 : index
    %400 = vector.load %arg5[%c0_128, %c3328] : memref<1x3456xf32, #tpu.memory_space<vmem>>, vector<1x128xf32>
    %401 = arith.truncf %398 : vector<1x128xf32> to vector<1x128xbf16>
    %cst_129 = arith.constant dense<0.000000e+00> : vector<1x128xf32>
    %402 = tpu.matmul %401, %399, %cst_129 {dimension_numbers = #tpu.dot_dimension_numbers<[1], [0], [0], [1], [0, 0, 1, 1], [], []>} : vector<1x128xbf16>, vector<128x128xbf16>, vector<1x128xf32> -> vector<1x128xf32>
    %403 = arith.addf %402, %400 : vector<1x128xf32>
    %404 = arith.mulf %403, %403 : vector<1x128xf32>
    %cst_130 = arith.constant dense<0.000000e+00> : vector<1xf32>
    %405 = vector.multi_reduction <add>, %404, %cst_130 [1] : vector<1x128xf32> to vector<1xf32>
    %406 = vector.shape_cast %405 : vector<1xf32> to vector<1x1xf32>
    %cst_131 = arith.constant 9.99999996E-13 : f32
    %407 = vector.broadcast %cst_131 : f32 to vector<1x1xf32>
    %408 = arith.addf %406, %407 : vector<1x1xf32>
    %409 = math.rsqrt %408 : vector<1x1xf32>
    %410 = vector.broadcast %409 : vector<1x1xf32> to vector<1x128xf32>
    %411 = arith.mulf %403, %410 : vector<1x128xf32>
    %c0_132 = arith.constant 0 : index
    %c0_133 = arith.constant 0 : index
    %c0_134 = arith.constant 0 : index
    %412 = vector.load %arg6[%c0_132, %c0_133, %c0_134] : memref<1x1x128xf32, #tpu.memory_space<vmem>>, vector<1x1x128xf32>
    %413 = vector.shape_cast %412 : vector<1x1x128xf32> to vector<1x128xf32>
    %414 = vector.shape_cast %411 : vector<1x128xf32> to vector<1x1x128xf32>
    tpu.vector_store %arg6[%c0_132, %c0_133, %c0_134], %414 {strides = array<i32>} : memref<1x1x128xf32, #tpu.memory_space<vmem>>, vector<1x1x128xf32>,
    return
  }
  func.func @transform_0(%arg0: i32) -> (i32, i32, i32) {
    %c0_i32 = arith.constant 0 : i32
    %c0_i32_0 = arith.constant 0 : i32
    %c0_i32_1 = arith.constant 0 : i32
    return %arg0, %c0_i32, %c0_i32_0 : i32, i32, i32
  }
  func.func @transform_1(%arg0: i32) -> (i32, i32, i32) {
    %c0_i32 = arith.constant 0 : i32
    %c0_i32_0 = arith.constant 0 : i32
    %c0_i32_1 = arith.constant 0 : i32
    return %arg0, %c0_i32, %c0_i32_0 : i32, i32, i32
  }
  func.func @transform_2(%arg0: i32) -> (i32, i32) {
    %c0_i32 = arith.constant 0 : i32
    %c0_i32_0 = arith.constant 0 : i32
    %c0_i32_1 = arith.constant 0 : i32
    return %c0_i32, %c0_i32_0 : i32, i32
  }
  func.func @transform_3(%arg0: i32) -> (i32, i32) {
    %c0_i32 = arith.constant 0 : i32
    %c0_i32_0 = arith.constant 0 : i32
    %c0_i32_1 = arith.constant 0 : i32
    return %c0_i32, %c0_i32_0 : i32, i32
  }
  func.func @transform_4(%arg0: i32) -> (i32, i32) {
    %c0_i32 = arith.constant 0 : i32
    %c0_i32_0 = arith.constant 0 : i32
    %c0_i32_1 = arith.constant 0 : i32
    return %c0_i32, %c0_i32_0 : i32, i32
  }
  func.func @transform_5(%arg0: i32) -> (i32, i32, i32) {
    %c0_i32 = arith.constant 0 : i32
    %c0_i32_0 = arith.constant 0 : i32
    %c0_i32_1 = arith.constant 0 : i32
    return %arg0, %c0_i32, %c0_i32_0 : i32, i32, i32
  }
}

</mosaic_0001>

<bundles_post_ra>
// kernel: clap_text_conditioner_forward.1
= control target key start
LH: loop header
LB: loop body
LE: loop exit
PB: predicated region body
PF: predicated region fallthrough
CT: control target
= control target key end

     0   :  { %10 = vsyncpa [#allocation3], 0  ;;  %s5096_s0 = inlined_call_operand.vmem [shape: s32[2,8,1], index: 0, kind: input, shape index: {}]   ;;  %s5097_s1 = inlined_call_operand.hbm [shape: f32[2,1,8], index: 1, kind: input, shape index: {}]   ;;  %s5098_s2 = inlined_call_operand.hbm [shape: f32[8,128], index: 2, kind: input, shape index: {}]   ;;  %s5099_s3 = inlined_call_operand.hbm [shape: bf16[256,2304], index: 3, kind: input, shape index: {}]   ;;  %s5100_s4 = inlined_call_operand.hbm [shape: f32[1,3456], index: 4, kind: input, shape index: {}]   ;;  %s5101_s5 = inlined_call_operand.hbm [shape: f32[2,1,128], index: 5, kind: output, shape index: {}]  }
   0x1   :  { %12 = vsyncpa [#allocation3 + $0x1], 0 }
   0x2   :  { %13 = vsyncpa [#allocation6], 0 }
   0x3   :  { %14 = vsyncpa [#allocation9], 0 }
   0x4   :  { %15 = vsyncpa [#allocation4], 0 }
   0x5   :  { %17 = vsyncpa [#allocation4 + $0x1], 0  ;;  %s4542_s18 = smov 0   ;;  %s4544_s19 = smov 0  }
   0x6   :  { %s4546_s20 = smov 0   ;;  %s4548_s21 = smov 0  }
   0x7 LB: > { %s4563_s22 = sadd.s32 4294967295, %s4495_s21   ;;  %s3361_s23 = sadd.s32 4294967294, %s4495_s21   ;;  %s4495_s21 = sphi %s4548_s21, %s5124_s21   ;;  %s4491_s20 = sphi %s4546_s20, %s5123_s20   ;;  %s4487_s19 = sphi %s4544_s19, %s5122_s19   ;;  %s4483_s18 = sphi %s4542_s18, %s5121_s18  }
   0x8   : > { %p69_p0 = scmp.ne.s32.totalorder %s4487_s19, %s4483_s18  ;;  %p5102_p1 = scmp.eq.s32.totalorder %s4563_s22, 0 }
   0x9   : > { %p162_p3 = scmp.eq.s32.totalorder %s3361_s23, 1  ;;  %p3362_p5 = scmp.ge.s32.totalorder %s4495_s21, 1 }
   0xa   : > { %p4572_p4 = por %p5102_p1, %p69_p0  ;;  %p169_p7 = scmp.lt.s32.totalorder %s4495_s21, 3 }
   0xb   : > { %p4577_p6 = por %p162_p3, %p69_p0  ;;  %s4497_s27 = smov [#allocation5]  }
   0xc   : > { %s5105_s24 = scalar_select %p4572_p4, 1, 0 }
   0xd   : > { %s5106_s25 = scalar_select %p4577_p6, 1, 0 }
   0xe   : > { %p4582_p8 = pnand %p3362_p5, %p169_p7  ;;  %s182_s28 = sshll.u32 %s4497_s27, 4  ;;  %s183_s28 = int_to_ptr.vmem [resolvable:$true] %s182_s28 }
   0xf   : > { %s4498_s29 = smov [#allocation7]   ;;  %s4499_s7 = smov [#allocation8]  }
  0x10   : > { %s5107_s26 = scalar_select %p4582_p8, 1, 0 }
  0x11   : > { %p3989_p10 = pneg %p4582_p8  ;;  %s192_s30 = sshll.u32 %s4498_s29, 4  ;;  %s4595_s30 = int_to_ptr.vmem [resolvable:$true] %s192_s30 }
  0x12   : > { %s4597_s8 = sshll.u32 %s4499_s7, 4  ;;  %s4307_s11 = scalar_lea.hbm %s5098_s2, 128  ;;  %s207_s8 = int_to_ptr.vmem [resolvable:$true] %s4597_s8 }
  0x13   : > { %p4591_p11 = pnand %p3989_p10, %p5102_p1  ;;  %p4308_p12 = scmp.ne.s32.totalorder %s5098_s2, %s4307_s11 }
  0x14   : > { %p4314_p5 = scmp.lt.u32.totalorder %s4307_s11, %s5098_s2 }
  0x15   : > { %p4607_p13 = pneg %p4591_p11 }
  0x17   : > { %p4310_p0 = pnand %p4607_p13, %p4308_p12 }
  0x19   : > { %p4311_p3 = pneg %p4310_p0 }
  0x1b   : > { %p4316_p7 = pnand %p4314_p5, %p4311_p3 }
  0x1d   : > { %4319 = shalt.err (!%p4316_p7)
}
  0x1e   : > { %s4320_s17 = scalar_lea.vmem %s183_s28, 128  ;;  %p4328_p2 = scmp.lt.s32.totalorder %s183_s28, %s183_s28 }
  0x1f   : > { %p4321_p10 = scmp.ne.s32.totalorder %s183_s28, %s4320_s17  ;;  %p4329_p6 = scmp.lt.s32.totalorder %s4320_s17, %s4320_s17 }
  0x21   : > { %p4323_p9 = pnand %p4321_p10, %p4607_p13  ;;  %p4330_p4 = por %p4329_p6, %p4328_p2 }
  0x23   : > { %p4324_p1 = pneg %p4323_p9 }
  0x25   : > { %p4331_p8 = pnand %p4330_p4, %p4324_p1 }
  0x27   : > { %4334 = shalt.err (!%p4331_p8)
}
  0x28   : > { %3992 = dma.hbm_to_vmem [thread:$0]  (!%p4591_p11), %s5098_s2, 128, %s183_s28, [#allocation6]  }
  0x29   : > { %s4335_s9 = scalar_lea.hbm %s5099_s3, 36864 }
  0x2a   : > { %p4336_p9 = scmp.ne.s32.totalorder %s5099_s3, %s4335_s9  ;;  %p4342_p1 = scmp.lt.u32.totalorder %s4335_s9, %s5099_s3 }
  0x2c   : > { %p4338_p12 = pnand %p4336_p9, %p4607_p13 }
  0x2e   : > { %p4339_p2 = pneg %p4338_p12 }
  0x30   : > { %p4344_p4 = pnand %p4342_p1, %p4339_p2 }
  0x32   : > { %4347 = shalt.err (!%p4344_p4)
}
  0x33   : > { %s4348_s28 = scalar_lea.vmem %s4595_s30, 36864  ;;  %p4356_p3 = scmp.lt.s32.totalorder %s4595_s30, %s4595_s30 }
  0x34   : > { %p4349_p6 = scmp.ne.s32.totalorder %s4595_s30, %s4348_s28  ;;  %p4357_p5 = scmp.lt.s32.totalorder %s4348_s28, %s4348_s28 }
  0x36   : > { %p4351_p8 = pnand %p4349_p6, %p4607_p13  ;;  %p4358_p7 = por %p4357_p5, %p4356_p3 }
  0x38   : > { %p4352_p0 = pneg %p4351_p8 }
  0x3a   : > { %p4359_p10 = pnand %p4358_p7, %p4352_p0 }
  0x3c   : > { %4362 = shalt.err (!%p4359_p10)
}
  0x3d   : > { %s4500_s15 = smov 1152   ;;  %s4501_s16 = smov 72  }
  0x3e   : > { %3995 = dma.hbm_to_vmem [thread:$0]  (!%p4591_p11), %s5099_s3, 36864, %s4595_s30, [#allocation6], %s4500_s15, %s4500_s15, %s4501_s16  }
  0x3f   : > { %s4363_s7 = scalar_lea.hbm %s5100_s4, 432 }
  0x40   : > { %p4364_p9 = scmp.ne.s32.totalorder %s5100_s4, %s4363_s7  ;;  %p4370_p1 = scmp.lt.u32.totalorder %s4363_s7, %s5100_s4 }
  0x42   : > { %p4366_p12 = pnand %p4364_p9, %p4607_p13 }
  0x44   : > { %p4367_p2 = pneg %p4366_p12 }
  0x46   : > { %p4372_p4 = pnand %p4370_p1, %p4367_p2 }
  0x48   : > { %4375 = shalt.err (!%p4372_p4)
}
  0x49   : > { %s4376_s13 = scalar_lea.vmem %s207_s8, 432  ;;  %s4383_s30 = scalar_lea.vmem %s207_s8, 448 }
  0x4a   : > { %p4377_p6 = scmp.ne.s32.totalorder %s207_s8, %s4376_s13  ;;  %p4384_p3 = scmp.lt.s32.totalorder %s207_s8, %s207_s8 }
  0x4b   : > { %p4385_p5 = scmp.lt.s32.totalorder %s4383_s30, %s4376_s13 }
  0x4c   : > { %p4379_p8 = pnand %p4377_p6, %p4607_p13 }
  0x4d   : > { %p4386_p7 = por %p4385_p5, %p4384_p3 }
  0x4e   : > { %p4380_p0 = pneg %p4379_p8 }
  0x50   : > { %p4387_p10 = pnand %p4386_p7, %p4380_p0 }
  0x52   : > { %4390 = shalt.err (!%p4387_p10)
}
  0x53   : > { %3998 = dma.hbm_to_vmem [thread:$0]  (!%p4591_p11), %s5100_s4, 432, %s207_s8, [#allocation9]  }
  0x54   : > { %s4666_s14 = sadd.s32 1, %s4495_s21   ;;  %s56_s6 = sadd.s32 1, %s4491_s20 }
  0x55   : > { %s53_s16 = ssub.s32 %s4495_s21, %s4666_s14  ;;  %p63_p9 = scmp.ne.s32.totalorder %s4491_s20, %s4487_s19 }
  0x56   : > { %p54_p13 = scmp.eq.s32.totalorder %s53_s16, 0  ;;  %p64_p12 = scmp.eq.s32.totalorder %s4495_s21, 0 }
  0x57   : > { %p4010_p2 = scmp.lt.s32.totalorder %s4495_s21, 2  ;;  %p5110_p4 = scmp.eq.s32.totalorder %s4563_s22, 1 }
  0x58   : > { %s4676_s17 = scalar_select %p54_p13, %s4491_s20, %s56_s6  }
  0x59   : > { %p65_p1 = por %p64_p12, %p63_p9  ;;  %p4680_p6 = por %p5110_p4, %p63_p9 }
  0x5a   : > { %s224_s27 = sand.u32 1, %s4491_s20   ;;  %s3367_s29 = sshll.u32 %s4495_s21, 4 }
  0x5b   : > { %s4689_s9 = scalar_lea.hbm %s5097_s1, %s3367_s29  ;;  %s227_s10 = scalar_lea.vmem [#allocation2], %s224_s27 }
  0x5c   : > { %s234_s11 = sshll.u32 %s227_s10, 4  ;;  %p4693_p11 = pnand %p4010_p2, %p65_p1  ;;  %s4691_s11 = int_to_ptr.vmem [resolvable:$true] %s234_s11 }
  0x5d   : > { %s225_s13 = scalar_lea.sflag [#allocation3], %s224_s27  ;;  %s4391_s30 = scalar_lea.hbm %s4689_s9, 16 }
  0x5e   : > { %p4392_p8 = scmp.ne.s32.totalorder %s4689_s9, %s4391_s30  ;;  %p4393_p0 = pneg %p4693_p11 }
  0x5f   : > { %s4396_s16 = scalar_lea.hbm %s5097_s1, 32  ;;  %p4397_p7 = scmp.lt.u32.totalorder %s4689_s9, %s5097_s1 }
  0x60   : > { %p4394_p3 = pnand %p4393_p0, %p4392_p8  ;;  %p4398_p10 = scmp.lt.u32.totalorder %s4396_s16, %s4391_s30 }
  0x61   : > { %p4400_p9 = scmp.lt.u32.totalorder %s4391_s30, %s4689_s9 }
  0x62   : > { %p4395_p5 = pneg %p4394_p3  ;;  %p4399_p13 = por %p4398_p10, %p4397_p7 }
  0x64   : > { %p4401_p12 = por %p4400_p9, %p4399_p13 }
  0x66   : > { %p4402_p2 = pnand %p4401_p12, %p4395_p5 }
  0x68   : > { %4405 = shalt.err (!%p4402_p2)
}
  0x69   : > { %s4406_s27 = scalar_lea.vmem %s4691_s11, 16  ;;  %s4502_s8 = smov [#allocation2]  }
  0x6a   : > { %p4407_p1 = scmp.ne.s32.totalorder %s4691_s11, %s4406_s27  ;;  %s4411_s7 = sshll.u32 %s4502_s8, 4  ;;  %s4412_s7 = int_to_ptr.vmem [resolvable:$false] %s4411_s7 }
  0x6b   : > { %s4413_s10 = scalar_lea.vmem %s4412_s7, 32  ;;  %p4414_p3 = scmp.lt.s32.totalorder %s4691_s11, %s4412_s7 }
  0x6c   : > { %p4409_p4 = pnand %p4407_p1, %p4393_p0  ;;  %p4415_p7 = scmp.lt.s32.totalorder %s4413_s10, %s4406_s27 }
  0x6e   : > { %p4410_p8 = pneg %p4409_p4  ;;  %p4416_p10 = por %p4415_p7, %p4414_p3 }
  0x70   : > { %p4417_p13 = pnand %p4416_p10, %p4410_p8 }
  0x72   : > { %4420 = shalt.err (!%p4417_p13)
}
  0x73   : > { %4002 = dma.hbm_to_vmem [thread:$0]  (!%p4693_p11), %s4689_s9, 16, %s4691_s11, %s225_s13  }
  0x74   : > { %p5113_p5 = scmp.ne.s32.totalorder %s5107_s26, 0 }
  0x75   : > { %s4725_s30 = sand.u32 (!%p5113_p5), 1, %s4487_s19   ;;  %p5114_p0 = scmp.ne.s32.totalorder (!%p5113_p5), %s5105_s24, 0 }
  0x76   : > { %243 = sbr.rel (%p5113_p5) target bundleno = 6182 (0x1826), region = 40  ;;  %s246_s28 = scalar_lea.sflag (!%p5113_p5), [#allocation3], %s4725_s30 }
  0x77   : > { %s248_s15 = scalar_lea.vmem (!%p5113_p5), [#allocation2], %s4725_s30 }
  0x7d   : > { %4466 = dma.done.wait (%p5114_p0), %s246_s28, 16  }
  0x7e   : > { %4468 = vsyncadd (%p5114_p0), %s246_s28, 4294967280  ;;  %p5115_p9 = scmp.eq.s32.totalorder %s4563_s22, 0 }
  0x80   : > { %4470 = dma.done.wait (%p5115_p9), [#allocation6], 36992   ;;  %p5116_p11 = pmov %p5115_p9 }
  0x81   : > { %p5117_p12 = pmov %p5115_p9 }
  0x82   : > { %4472 = vsyncadd (%p5116_p11), [#allocation6], 4294930304 }
  0x83   : > { %4474 = dma.done.wait (%p5117_p12), [#allocation9], 432   ;;  %p5118_p2 = pmov %p5115_p9 }
  0x84   : > { %p289_p1 = scmp.lt.s32.totalorder %s4563_s22, 1  ;;  %v4503_v0 = vmov 0   ;;  %v4504_v1 = vmov 0.0   ;;  %v4061_v3 = vld [vmem:[#allocation7] ss:$72 sps:$4 sm:$0xff]   ;;  %vm4505_vm0 = vmmov 0   ;;  %v296_v11 = vlaneseq }
  0x85   : > { %4476 = vsyncadd (%p5118_p2), [#allocation9], 4294966864  ;;  %4060 = vset.pattern.permute.xlu0 %v4503_v0  ;;  %3717 = vmatprep.subr.bf16.mxu0 %v4504_v1  ;;  %v4062_v4 = vld [vmem:[#allocation7 + $0x90] ss:$72 sps:$4 sm:$0xff]   ;;  %v4063_v5 = vld [vmem:[#allocation7 + $0x120] ss:$72 sps:$4 sm:$0xff]  }
  0x86   : > { %s290_s24 = scalar_select %p289_p1, %s4563_s22, 1  ;;  %652 = vmatprep.mubr.bf16.mxu1 %v4503_v0  ;;  %3718 = vmatpush3.bf16.msra.mxu0 %v4061_v3  ;;  %v4064_v6 = vld [vmem:[#allocation7 + $0x1b0] ss:$72 sps:$4 sm:$0xff]   ;;  %v4065_v7 = vld [vmem:[#allocation7 + $0x240] ss:$72 sps:$4 sm:$0xff]   ;;  %v297_v12 = vand.u32 127, %v296_v11 }
  0x87   : > { %3719 = vmatprep.subr.bf16.mxu0 %v4504_v1  ;;  %3733 = vmatprep.mubr.msk.bf16.mxu0 %vm4505_vm0, %v4504_v1  ;;  %v4066_v8 = vld [vmem:[#allocation7 + $0x2d0] ss:$72 sps:$4 sm:$0xff]   ;;  %v4067_v9 = vld [vmem:[#allocation7 + $0x360] ss:$72 sps:$4 sm:$0xff]   ;;  %v4506_v14 = vmov 1.0|1.0  }
  0x88   : > { %s3372_s26 = sshll.u32 %s290_s24, 3  ;;  %v4068_v10 = vld [vmem:[#allocation7 + $0x3f0] ss:$72 sps:$4 sm:$0xff]   ;;  %v4071_v16 = vld [vmem:[#allocation7 + $0x4] ss:$72 sps:$4 sm:$0xff]   ;;  %v4786_v61 = vshrl.u32 %v296_v11, 7 }
  0x89   : > { %s292_s12 = scalar_lea.vmem %s5096_s0, %s3372_s26  ;;  %v4069_v15 = vld [vmem:[#allocation7 + $0x8] ss:$72 sps:$4 sm:$0xff]   ;;  %v4072_v17 = vld [vmem:[#allocation7 + $0xc] ss:$72 sps:$4 sm:$0xff]   ;;  %v4073_v18 = vld [vmem:[#allocation7 + $0x98] ss:$72 sps:$4 sm:$0xff]  }
  0x8a   : > { %v294_v2 = vld [vmem:[%s292_s12] sm:$0xff]  ;;  %3720 = vmatpush3.bf16.msra.mxu0 %v4062_v4  ;;  %620 = vmatprep.subr.bf16.mxu1 %v4069_v15  ;;  %v4077_v28 = vld [vmem:[#allocation7 + $0x128] ss:$72 sps:$4 sm:$0xff]   ;;  %v4079_v29 = vld [vmem:[#allocation7 + $0x124] ss:$72 sps:$4 sm:$0xff]   ;;  %v4789_v62 = vsub.s32 1, %v4786_v61 }
  0x8b   : > { %299 = vperm.xlu0 %4060, %v294_v2   ;;  %3721 = vmatprep.subr.bf16.mxu0 %v4504_v1  ;;  %v321_v19 = vld [vmem:[#allocation5] sm:$0xff]  ;;  %v4080_v30 = vld [vmem:[#allocation7 + $0x12c] ss:$72 sps:$4 sm:$0xff]   ;;  %v4085_v34 = vld [vmem:[#allocation7 + $0x248] ss:$72 sps:$4 sm:$0xff]   ;;  %v487_v2 = vsub.s32 2, %v4786_v61 }
  0x8c   : > { %621 = vmatpush1.bf16.msra.mxu1 %v4071_v16  ;;  %v4075_v26 = vld [vmem:[#allocation7 + $0x94] ss:$72 sps:$4 sm:$0xff]   ;;  %v4081_v31 = vld [vmem:[#allocation7 + $0x1b8] ss:$72 sps:$4 sm:$0xff]   ;;  %v4087_v35 = vld [vmem:[#allocation7 + $0x244] ss:$72 sps:$4 sm:$0xff]  }
  0x8d   : > { %622 = vmatprep.subr.bf16.mxu1 %v4073_v18  ;;  %v4076_v27 = vld [vmem:[#allocation7 + $0x9c] ss:$72 sps:$4 sm:$0xff]   ;;  %v4088_v36 = vld [vmem:[#allocation7 + $0x24c] ss:$72 sps:$4 sm:$0xff]   ;;  %v4089_v37 = vld [vmem:[#allocation7 + $0x2d8] ss:$72 sps:$4 sm:$0xff]  }
  0x8e   : > { %3722 = vmatpush3.bf16.msra.mxu0 %v4063_v5  ;;  %v4083_v32 = vld [vmem:[#allocation7 + $0x1b4] ss:$72 sps:$4 sm:$0xff]   ;;  %v4093_v40 = vld [vmem:[#allocation7 + $0x368] ss:$72 sps:$4 sm:$0xff]   ;;  %v4095_v41 = vld [vmem:[#allocation7 + $0x364] ss:$72 sps:$4 sm:$0xff]  }
  0x8f   : > { %3723 = vmatprep.subr.bf16.mxu0 %v4504_v1  ;;  %v4084_v33 = vld [vmem:[#allocation7 + $0x1bc] ss:$72 sps:$4 sm:$0xff]   ;;  %v4096_v42 = vld [vmem:[#allocation7 + $0x36c] ss:$72 sps:$4 sm:$0xff]   ;;  %v4097_v43 = vld [vmem:[#allocation7 + $0x3f8] ss:$72 sps:$4 sm:$0xff]  }
  0x90   : > { %623 = vmatpush1.bf16.msra.mxu1 %v4075_v26  ;;  %v4091_v38 = vld [vmem:[#allocation7 + $0x2d4] ss:$72 sps:$4 sm:$0xff]   ;;  %v3384_v55 = vld [vmem:[#allocation8] ss:$0 sm:$0xff]  ;;  %v3385_v57 = vld [vmem:[#allocation8 + $0x1] ss:$0 sm:$0xff] }
  0x91   : > { %624 = vmatprep.subr.bf16.mxu1 %v4077_v28  ;;  %v4092_v39 = vld [vmem:[#allocation7 + $0x2dc] ss:$72 sps:$4 sm:$0xff]   ;;  %v4794_v4 = vsub.s32 0, %v4786_v61  ;;  %vm710_vm3 = vcmask 261120   ;;  %s4507_s13 = smov 32   ;;  %s4508_s16 = smov 96  }
  0x92   : > { %3724 = vmatpush3.bf16.msra.mxu0 %v4064_v6  ;;  %v4099_v44 = vld [vmem:[#allocation7 + $0x3f4] ss:$72 sps:$4 sm:$0xff]   ;;  %v474_v63 = vld [vmem:[#allocation8 + $0x2] sm:$0x7]  ;;  %vm771_vm4 = vcmask 1043456   ;;  %vm757_vm6 = vcmask 64512  }
  0x93   : > { %3725 = vmatprep.subr.bf16.mxu0 %v4504_v1  ;;  %v4100_v45 = vld [vmem:[#allocation7 + $0x3fc] ss:$72 sps:$4 sm:$0xff]   ;;  %v484_v3 = vrot.slane %v474_v63, %v4789_v62  ;;  %v480_v15 = vrot.slane %v474_v63, %v4794_v4  ;;  %s4510_s6 = smov 64   ;;  %vm1163_vm7 = vcmask 523264   ;;  %vm1165_vm8 = vcmask 785408   ;;  %s3566_s29 = sshll.u32 %s4563_s22, 4 }
  0x94   : > { %625 = vmatpush1.bf16.msra.mxu1 %v4079_v29  ;;  %vm3236_vm9 = vcmask 1040384   ;;  %s288_s27 = scalar_lea.vmem [#allocation10], %s4725_s30  ;;  %s5052_s28 = scalar_lea.hbm %s5101_s5, %s3566_s29 }
  0x95   : > { %626 = vmatprep.subr.bf16.mxu1 %v4081_v31  ;;  %s3257_s8 = sshll.u32 %s288_s27, 4  ;;  %s4511_s22 = smov [#allocation10]   ;;  %s5054_s8 = int_to_ptr.vmem [resolvable:$true] %s3257_s8 }
  0x96   : > { %3726 = vmatpush3.bf16.msra.mxu0 %v4065_v7  ;;  %s4421_s24 = scalar_lea.vmem %s5054_s8, 16  ;;  %s4425_s26 = sshll.u32 %s4511_s22, 4  ;;  %s4426_s26 = int_to_ptr.vmem [resolvable:$false] %s4425_s26 }
  0x97   : > { %3727 = vmatprep.subr.bf16.mxu0 %v4504_v1  ;;  %p4422_p4 = scmp.ne.s32.totalorder %s5054_s8, %s4421_s24  ;;  %s4427_s9 = scalar_lea.vmem %s4426_s26, 32 }
  0x98   : > { %627 = vmatpush1.bf16.msra.mxu1 %v4083_v32  ;;  %p4428_p7 = scmp.lt.s32.totalorder %s5054_s8, %s4426_s26  ;;  %p4429_p10 = scmp.lt.s32.totalorder %s4427_s9, %s4421_s24 }
  0x99   : > { %628 = vmatprep.subr.bf16.mxu1 %v4085_v34  ;;  %p4423_p8 = pnand %p4422_p4, %p4680_p6 }
  0x9a   : > { %3728 = vmatpush3.bf16.msra.mxu0 %v4066_v8  ;;  %p4430_p13 = por %p4429_p10, %p4428_p7 }
  0x9b   : > { %3729 = vmatprep.subr.bf16.mxu0 %v4504_v1  ;;  %p4424_p3 = pneg %p4423_p8 }
  0x9c   : > { %629 = vmatpush1.bf16.msra.mxu1 %v4087_v35 }
  0x9d   : > { %630 = vmatprep.subr.bf16.mxu1 %v4089_v37  ;;  %p4431_p5 = pnand %p4430_p13, %p4424_p3 }
  0x9e   : > { %3730 = vmatpush3.bf16.msra.mxu0 %v4067_v9  ;;  %v488_v9 = vrot.slane %v474_v63, %v487_v2 }
  0x9f   : > { %3731 = vmatprep.subr.bf16.mxu0 %v4504_v1 }
  0xa0   : > { %631 = vmatpush1.bf16.msra.mxu1 %v4091_v38 }
  0xa1   : > { %632 = vmatprep.subr.bf16.mxu1 %v4093_v40 }
  0xa2   : > { %3732 = vmatpush3.bf16.msra.mxu0 %v4068_v10 }
  0xa3   : > { %3737 = vmatprep.subr.bf16.mxu0 %v4504_v1 }
  0xa4   : > { %633 = vmatpush1.bf16.msra.mxu1 %v4095_v41 }
  0xa5   : > { %634 = vmatprep.subr.bf16.mxu1 %v4097_v43 }
  0xa8   : > { %635 = vmatpush1.bf16.msra.mxu1 %v4099_v44 }
  0xa9   : > { %3757 = vmatprep.subr.bf16.mxu1 %v4504_v1 }
 0x10a   : > { %v300_v13 = vpop.permute.xlu0 %299 }
 0x10b   : > { %vm301_vm1 = vcmp.eq.s32.totalorder %v297_v12, %v300_v13 }
 0x10c   : > { %vm3382_vm2 = vmpackc.low %vm301_vm1, %vm301_vm1 }
 0x10d   : > { %3734 = vmatmul.mubr.msk.bf16.vlgmr.msra.gmra.mrb[0].mxu0 %vm3382_vm2, %v4506_v14 }
 0x10e   : > { %3753 = vmatprep.mubr.msk.bf16.mxu0 %vm4505_vm0, %v4504_v1  ;;  %3738 = vmatpush3.bf16.msra.mxu0 %v4072_v17 }
 0x10f   : > { %3739 = vmatprep.subr.bf16.mxu0 %v4504_v1 }
 0x112   : > { %3740 = vmatpush3.bf16.msra.mxu0 %v4076_v27 }
 0x113   : > { %3741 = vmatprep.subr.bf16.mxu0 %v4504_v1 }
 0x116   : > { %3742 = vmatpush3.bf16.msra.mxu0 %v4080_v30 }
 0x117   : > { %3743 = vmatprep.subr.bf16.mxu0 %v4504_v1 }
 0x11a   : > { %3744 = vmatpush3.bf16.msra.mxu0 %v4084_v33 }
 0x11b   : > { %3745 = vmatprep.subr.bf16.mxu0 %v4504_v1 }
 0x11e   : > { %3746 = vmatpush3.bf16.msra.mxu0 %v4088_v36 }
 0x11f   : > { %3747 = vmatprep.subr.bf16.mxu0 %v4504_v1 }
 0x122   : > { %3748 = vmatpush3.bf16.msra.mxu0 %v4092_v39 }
 0x123   : > { %3749 = vmatprep.subr.bf16.mxu0 %v4504_v1 }
 0x126   : > { %3750 = vmatpush3.bf16.msra.mxu0 %v4096_v42 }
 0x127   : > { %3751 = vmatprep.subr.bf16.mxu0 %v4504_v1 }
 0x12a   : > { %3752 = vmatpush3.bf16.msra.mxu0 %v4100_v45 }
 0x12b   : > { %3781 = vmatprep.subr.bf16.mxu0 %v4504_v1 }
 0x1e0   : > { %v404_v20 = vpop.f32.mrb[0].mxu0 }
 0x1e1   : > { %v4763_v21 = vadd.f32 %v404_v20, %v321_v19  ;;  %v3735_v22 = vpop.f32.mrb[1].mxu0 }
 0x1e2   : > { %v407_v23 = vpop.f32.mrb[2].mxu0 }
 0x1e3   : > { %412 = vadd.xlane.f32.xlu0 %v4763_v21  ;;  %v3736_v24 = vpop.f32.mrb[3].mxu0  ;;  %v416_v25 = vmul.f32 %v4763_v21, %v4763_v21  ;;  %v295_v23 = vld [vmem:[%s248_s15] sm:$0x1]  ;;  %s3245_s15 = scalar_lea.sflag [#allocation4], %s4725_s30 }
 0x1e4   : > { %vm440_vm5 = vcmp.gt.f32.partialorder %v295_v23, 0.5  ;;  %v4509_v24 = vmov -1e+09  }
 0x1e5   : > { %417 = vadd.xlane.f32.xlu1 %v416_v25  ;;  %v441_v25 = vsel %vm440_vm5, 0.0, %v4509_v24 }
 0x1e6   : > { %v4814_v26 = vrot.slane %v441_v25, %v4794_v4 }
 0x270   : > { %v413_v46 = vpop.xlane.xlu0 %412 }
 0x271   : > { %v415_v47 = vmul.f32 0.0078125, %v413_v46 }
 0x272   : > { %v418_v48 = vpop.xlane.xlu1 %417 }
 0x273   : > { %v420_v49 = vmul.f32 %v415_v47, %v415_v47  ;;  %v419_v50 = vmul.f32 0.0078125, %v418_v48  ;;  %v422_v53 = vsub.f32 %v4763_v21, %v415_v47 }
 0x275   : > { %v421_v51 = vsub.f32 %v419_v50, %v420_v49 }
 0x277   : > { %v423_v52 = vadd.f32 1e-05, %v421_v51 }
 0x279   : > { %4253 = vrsqrt.f32 %v423_v52 }
 0x283   : > { %v4254_v54 = vpop.eup %4253 }
 0x284   : > { %v425_v56 = vmul.f32 %v4254_v54, %v422_v53 }
 0x286   : > { %v432_v58 = vmul.f32 %v3384_v55, %v425_v56 }
 0x288   : > { %v4777_v59 = vadd.f32 %v3385_v57, %v432_v58 }
 0x28a   : > { %v475_v60 = vpack.c.bf16 %v4777_v59, %v4777_v59 }
 0x28c   : > { %653 = vmatmul.mubr.bf16.vlgmr.msra.gmra.mrb[0].mxu1 %v475_v60  ;;  %3754 = vmatmul.mubr.bf16.vlgmr.msra.gmra.mrb[4].mxu0 %v475_v60 }
 0x28d   : > { %3759 = vmatprep.mubr.msk.bf16.mxu1 %vm4505_vm0, %v4504_v1  ;;  %3783 = vmatprep.mubr.msk.bf16.mxu0 %vm4505_vm0, %v4504_v1 }
 0x35f   : > { %v654_v5 = vpop.f32.mrb[0].mxu1  ;;  %v695_v6 = vpop.f32.mrb[4].mxu0 }
 0x360   : > { %v656_v7 = vpop.f32.mrb[1].mxu1  ;;  %v3755_v8 = vpop.f32.mrb[5].mxu0  ;;  %v696_v17 = vadd.f32 %v695_v6, %v488_v9  ;;  %v655_v19 = vadd.f32 %v654_v5, %v480_v15 }
 0x361   : > { %v657_v10 = vadd.f32 %v656_v7, %v484_v3  ;;  %v658_v11 = vpop.f32.mrb[2].mxu1  ;;  %v698_v12 = vpop.f32.mrb[6].mxu0 }
 0x362   : > { %v659_v13 = vpop.f32.mrb[3].mxu1  ;;  %v3756_v14 = vpop.f32.mrb[7].mxu0  ;;  %v4803_v20 = vpack.c.bf16 %v696_v17, %v696_v17  ;;  %v701_v21 = vpack.c.bf16 %v655_v19, %v655_v19 }
 0x363   : > { %v702_v16 = vpack.c.bf16 %v657_v10, %v657_v10 }
 0x364   : > { %v773_v22 = vsel %vm771_vm4, %v4803_v20, 0 }
 0x365   : > { %1042 = vrot.lane.b32.xlu0 %v702_v16, %s4507_s13  ;;  %821 = vrot.lane.b32.xlu1 %v702_v16, %s4508_s16  ;;  %v715_v18 = vsel %vm710_vm3, %v702_v16, 0 }
 0x366   : > { %3758 = vmatpush3.bf16.xpose.msra.mxu1 %v715_v18 }
 0x367   : > { %3763 = vmatprep.subr.bf16.mxu1 %v4504_v1 }
 0x36d   : > { %3760 = vmatmul.mubr.msk.bf16.vlgmr.msra.gmra.mrb[4].mxu1 %vm710_vm3, %v701_v21 }
 0x36e   : > { %3764 = vmatpush3.bf16.msra.mxu1 %v773_v22  ;;  %3765 = vmatprep.mubr.msk.bf16.mxu1 %vm4505_vm0, %v4504_v1 }
 0x36f   : > { %3769 = vmatprep.subr.bf16.mxu1 %v4504_v1 }
 0x3d7   : > { %v822_v33 = vpop.permute.xlu1 %821  ;;  %v1043_v40 = vpop.permute.xlu0 %1042 }
 0x3d8   : > { %v1048_v44 = vsel %vm710_vm3, %v1043_v40, 0  ;;  %v827_v45 = vsel %vm710_vm3, %v822_v33, 0  ;;  %v4103_v40 = vld [vmem:[#allocation7 + $0x130] ss:$72 sps:$4 sm:$0xff]  }
 0x440   : > { %v751_v27 = vpop.f32.mrb[4].mxu1 }
 0x441   : > { %v752_v28 = vadd.f32 %v751_v27, %v4814_v26  ;;  %v3761_v29 = vpop.f32.mrb[5].mxu1 }
 0x442   : > { %v754_v30 = vpop.f32.mrb[6].mxu1 }
 0x443   : > { %v3762_v31 = vpop.f32.mrb[7].mxu1  ;;  %v758_v32 = vsel %vm757_vm6, %v752_v28, -inf }
 0x444   : > { %759 = vmax.xlane.f32.xlu1 %v758_v32 }
 0x455   : > { %818 = vrot.lane.b32.xlu1 %v701_v21, %s4508_s16 }
 0x459   : > { %932 = vrot.lane.b32.xlu1 %v702_v16, %s4510_s6 }
 0x45d   : > { %930 = vrot.lane.b32.xlu1 %v701_v21, %s4510_s6 }
 0x461   : > { %1040 = vrot.lane.b32.xlu1 %v701_v21, %s4507_s13 }
 0x4d1   : > { %v760_v34 = vpop.xlane.xlu1 %759 }
 0x4d2   : > { %v761_v35 = vsub.f32 %v752_v28, %v760_v34 }
 0x4d4   : > { %v762_v36 = vmul.f32 1.442695, %v761_v35 }
 0x4d5   : > { %v819_v37 = vpop.permute.xlu1 %818 }
 0x4d6   : > { %4255 = vpow2.f32 %v762_v36 }
 0x4d9   : > { %v933_v38 = vpop.permute.xlu1 %932 }
 0x4da   : > { %v938_v39 = vsel %vm710_vm3, %v933_v38, 0  ;;  %v4101_v38 = vld [vmem:[#allocation7 + $0x10] ss:$72 sps:$4 sm:$0xff]  }
 0x4db   : > { %3782 = vmatpush3.bf16.xpose.msra.mxu0 %v938_v39  ;;  %v4102_v39 = vld [vmem:[#allocation7 + $0xa0] ss:$72 sps:$4 sm:$0xff]  }
 0x4dc   : > { %3793 = vmatprep.subr.bf16.mxu0 %v4504_v1 }
 0x4dd   : > { %v931_v42 = vpop.permute.xlu1 %930 }
 0x4e0   : > { %v4824_v41 = vpop.eup %4255 }
 0x4e1   : > { %v767_v43 = vpack.c.bf16 %v4824_v41, %v4824_v41  ;;  %v1041_v46 = vpop.permute.xlu1 %1040 }
 0x4e2   : > { %3784 = vmatmul.mubr.msk.bf16.vlgmr.msra.gmra.mrb[8].mxu0 %vm710_vm3, %v931_v42  ;;  %v4104_v42 = vld [vmem:[#allocation7 + $0x1c0] ss:$72 sps:$4 sm:$0xff]  }
 0x4e3   : > { %3766 = vmatmul.mubr.msk.bf16.vlgmr.msra.gmra.mrb[8].mxu1 %vm757_vm6, %v767_v43  ;;  %3794 = vmatpush3.bf16.xpose.msra.mxu0 %v1048_v44  ;;  %v4105_v43 = vld [vmem:[#allocation7 + $0x250] ss:$72 sps:$4 sm:$0xff]  }
 0x4e4   : > { %3770 = vmatpush3.bf16.xpose.msra.mxu1 %v827_v45  ;;  %3795 = vmatprep.mubr.msk.bf16.mxu0 %vm4505_vm0, %v4504_v1  ;;  %v4106_v45 = vld [vmem:[#allocation7 + $0x2e0] ss:$72 sps:$4 sm:$0xff]  }
 0x4e5   : > { %3771 = vmatprep.mubr.msk.bf16.mxu1 %vm4505_vm0, %v4504_v1  ;;  %3775 = vmatprep.subr.bf16.mxu1 %v4504_v1 }
 0x4e6   : > { %3805 = vmatprep.subr.bf16.mxu0 %v4504_v1 }
 0x4ea   : > { %3796 = vmatmul.mubr.msk.bf16.vlgmr.msra.gmra.mrb[12].mxu0 %vm710_vm3, %v1041_v46  ;;  %v4107_v46 = vld [vmem:[#allocation7 + $0x370] ss:$72 sps:$4 sm:$0xff]  }
 0x4eb   : > { %3772 = vmatmul.mubr.msk.bf16.vlgmr.msra.gmra.mrb[12].mxu1 %vm710_vm3, %v819_v37  ;;  %3821 = vmatprep.mubr.msk.bf16.mxu0 %vm4505_vm0, %v4504_v1 }
 0x4ec   : > { %3777 = vmatprep.mubr.msk.bf16.mxu1 %vm4505_vm0, %v4504_v1  ;;  %3806 = vmatpush3.bf16.msra.mxu0 %v4101_v38  ;;  %v4121_v38 = vld [vmem:[#allocation7 + $0x254] ss:$72 sps:$4 sm:$0xff]  }
 0x4ed   : > { %3807 = vmatprep.subr.bf16.mxu0 %v4504_v1 }
 0x4f0   : > { %3808 = vmatpush3.bf16.msra.mxu0 %v4102_v39  ;;  %v4126_v39 = vld [vmem:[#allocation7 + $0x2e8] ss:$72 sps:$4 sm:$0xff]  }
 0x4f1   : > { %3809 = vmatprep.subr.bf16.mxu0 %v4504_v1 }
 0x4f4   : > { %3810 = vmatpush3.bf16.msra.mxu0 %v4103_v40  ;;  %v4124_v40 = vld [vmem:[#allocation7 + $0x2e4] ss:$72 sps:$4 sm:$0xff]  }
 0x4f5   : > { %3811 = vmatprep.subr.bf16.mxu0 %v4504_v1 }
 0x4f8   : > { %3812 = vmatpush3.bf16.msra.mxu0 %v4104_v42  ;;  %v4132_v42 = vld [vmem:[#allocation7 + $0x408] ss:$72 sps:$4 sm:$0xff]  }
 0x4f9   : > { %3813 = vmatprep.subr.bf16.mxu0 %v4504_v1 }
 0x4fc   : > { %3814 = vmatpush3.bf16.msra.mxu0 %v4105_v43  ;;  %v4130_v43 = vld [vmem:[#allocation7 + $0x404] ss:$72 sps:$4 sm:$0xff]  }
 0x4fd   : > { %3815 = vmatprep.subr.bf16.mxu0 %v4504_v1 }
 0x500   : > { %3816 = vmatpush3.bf16.msra.mxu0 %v4106_v45 }
 0x501   : > { %3817 = vmatprep.subr.bf16.mxu0 %v4504_v1 }
 0x504   : > { %3818 = vmatpush3.bf16.msra.mxu0 %v4107_v46 }
 0x505   : > { %3819 = vmatprep.subr.bf16.mxu0 %v4504_v1 }
 0x5b5   : > { %v974_v47 = vpop.f32.mrb[8].mxu0 }
 0x5b6   : > { %v975_v48 = vadd.f32 %v974_v47, %v4814_v26  ;;  %v4845_v49 = vpop.f32.mrb[8].mxu1  ;;  %v3785_v50 = vpop.f32.mrb[9].mxu0 }
 0x5b7   : > { %v3767_v51 = vpop.f32.mrb[9].mxu1  ;;  %v977_v52 = vpop.f32.mrb[10].mxu0 }
 0x5b8   : > { %v812_v53 = vpop.f32.mrb[10].mxu1  ;;  %v3786_v54 = vpop.f32.mrb[11].mxu0  ;;  %v980_v55 = vsel %vm757_vm6, %v975_v48, -inf }
 0x5b9   : > { %v3768_v56 = vpop.f32.mrb[11].mxu1  ;;  %981 = vmax.xlane.f32.xlu0 %v980_v55  ;;  %v4108_v55 = vld [vmem:[#allocation7 + $0x400] ss:$72 sps:$4 sm:$0xff]  }
 0x5ba   : > { %3820 = vmatpush3.bf16.msra.mxu0 %v4108_v55 }
 0x5bd   : > { %v1084_v57 = vpop.f32.mrb[12].mxu0 }
 0x5be   : > { %v1085_v58 = vadd.f32 %v1084_v57, %v4814_v26  ;;  %v863_v60 = vpop.f32.mrb[12].mxu1  ;;  %v3797_v63 = vpop.f32.mrb[13].mxu0 }
 0x5bf   : > { %v3773_v3 = vpop.f32.mrb[13].mxu1  ;;  %v1087_v5 = vpop.f32.mrb[14].mxu0  ;;  %v864_v6 = vadd.f32 %v863_v60, %v4814_v26 }
 0x5c0   : > { %v866_v7 = vpop.f32.mrb[14].mxu1  ;;  %v3798_v8 = vpop.f32.mrb[15].mxu0  ;;  %v1090_v9 = vsel %vm757_vm6, %v1085_v58, -inf }
 0x5c1   : > { %v3774_v10 = vpop.f32.mrb[15].mxu1  ;;  %1091 = vmax.xlane.f32.xlu1 %v1090_v9  ;;  %v869_v11 = vsel %vm757_vm6, %v864_v6, -inf }
 0x5c5   : > { %870 = vmax.xlane.f32.xlu1 %v869_v11 }
 0x5cf   : > { %990 = vrot.lane.b32.xlu0 %v4803_v20, %s4510_s6 }
 0x5d6   : > { %880 = vrot.lane.b32.xlu1 %v4803_v20, %s4508_s16 }
 0x5da   : > { %1100 = vrot.lane.b32.xlu1 %v4803_v20, %s4507_s13  ;;  %v764_v20 = vsel %vm757_vm6, %v4824_v41, 0.0 }
 0x646   : > { %v982_v12 = vpop.xlane.xlu0 %981 }
 0x647   : > { %v983_v13 = vsub.f32 %v975_v48, %v982_v12 }
 0x649   : > { %v984_v14 = vmul.f32 1.442695, %v983_v13 }
 0x64a   : > { %v991_v28 = vpop.permute.xlu0 %990 }
 0x64b   : > { %4257 = vpow2.f32 %v984_v14  ;;  %v996_v32 = vsel %vm771_vm4, %v991_v28, 0 }
 0x64e   : > { %v1092_v15 = vpop.xlane.xlu1 %1091 }
 0x64f   : > { %v1093_v16 = vsub.f32 %v1085_v58, %v1092_v15 }
 0x651   : > { %v1094_v21 = vmul.f32 1.442695, %v1093_v16 }
 0x652   : > { %v871_v17 = vpop.xlane.xlu1 %870 }
 0x653   : > { %v872_v18 = vsub.f32 %v864_v6, %v871_v17 }
 0x655   : > { %v4258_v19 = vpop.eup %4257  ;;  %v873_v22 = vmul.f32 1.442695, %v872_v18 }
 0x656   : > { %v881_v23 = vpop.permute.xlu1 %880  ;;  %v986_v24 = vsel %vm757_vm6, %v4258_v19, 0.0  ;;  %v989_v35 = vpack.c.bf16 %v4258_v19, %v4258_v19 }
 0x657   : > { %4259 = vpow2.f32 %v873_v22  ;;  %v886_v25 = vsel %vm771_vm4, %v881_v23, 0  ;;  %987 = vadd.xlane.f32.xlu0 %v986_v24  ;;  %v4109_v22 = vld [vmem:[#allocation7 + $0x14] ss:$72 sps:$4 sm:$0xff]   ;;  %v4111_v23 = vld [vmem:[#allocation7 + $0x18] ss:$72 sps:$4 sm:$0xff]  }
 0x658   : > { %3776 = vmatpush3.bf16.msra.mxu1 %v886_v25  ;;  %4261 = vpow2.f32 %v1094_v21  ;;  %v4114_v24 = vld [vmem:[#allocation7 + $0xa8] ss:$72 sps:$4 sm:$0xff]   ;;  %v4112_v25 = vld [vmem:[#allocation7 + $0xa4] ss:$72 sps:$4 sm:$0xff]  }
 0x659   : > { %3787 = vmatprep.subr.bf16.mxu1 %v4504_v1 }
 0x65a   : > { %v1101_v34 = vpop.permute.xlu1 %1100 }
 0x65b   : > { %765 = vadd.xlane.f32.xlu0 %v764_v20  ;;  %v1106_v36 = vsel %vm771_vm4, %v1101_v34, 0  ;;  %v4115_v34 = vld [vmem:[#allocation7 + $0x134] ss:$72 sps:$4 sm:$0xff]  }
 0x661   : > { %v4260_v27 = vpop.eup %4259 }
 0x662   : > { %v875_v29 = vsel %vm757_vm6, %v4260_v27, 0.0  ;;  %v878_v30 = vpack.c.bf16 %v4260_v27, %v4260_v27  ;;  %v4262_v31 = vpop.eup %4261 }
 0x663   : > { %876 = vadd.xlane.f32.xlu1 %v875_v29  ;;  %v1096_v33 = vsel %vm757_vm6, %v4262_v31, 0.0  ;;  %v1099_v37 = vpack.c.bf16 %v4262_v31, %v4262_v31 }
 0x664   : > { %3778 = vmatmul.mubr.msk.bf16.vlgmr.msra.gmra.mrb[16].mxu1 %vm757_vm6, %v878_v30 }
 0x665   : > { %3788 = vmatpush3.bf16.msra.mxu1 %v996_v32  ;;  %3789 = vmatprep.mubr.msk.bf16.mxu1 %vm4505_vm0, %v4504_v1 }
 0x666   : > { %3799 = vmatprep.subr.bf16.mxu1 %v4504_v1 }
 0x667   : > { %1097 = vadd.xlane.f32.xlu1 %v1096_v33  ;;  %v4117_v33 = vld [vmem:[#allocation7 + $0x138] ss:$72 sps:$4 sm:$0xff]  }
 0x66c   : > { %3790 = vmatmul.mubr.msk.bf16.vlgmr.msra.gmra.mrb[20].mxu1 %vm757_vm6, %v989_v35  ;;  %v4120_v35 = vld [vmem:[#allocation7 + $0x1c8] ss:$72 sps:$4 sm:$0xff]  }
 0x66d   : > { %3800 = vmatpush3.bf16.msra.mxu1 %v1106_v36  ;;  %3801 = vmatprep.mubr.msk.bf16.mxu1 %vm4505_vm0, %v4504_v1  ;;  %v4118_v36 = vld [vmem:[#allocation7 + $0x1c4] ss:$72 sps:$4 sm:$0xff]  }
 0x66e   : > { %1418 = vmatprep.subr.bf16.mxu1 %v4111_v23 }
 0x674   : > { %3802 = vmatmul.mubr.msk.bf16.vlgmr.msra.gmra.mrb[24].mxu1 %vm757_vm6, %v1099_v37  ;;  %v4123_v37 = vld [vmem:[#allocation7 + $0x258] ss:$72 sps:$4 sm:$0xff]  }
 0x675   : > { %1450 = vmatprep.mubr.bf16.mxu1 %v4503_v0  ;;  %1419 = vmatpush1.bf16.msra.mxu1 %v4109_v22 }
 0x676   : > { %1420 = vmatprep.subr.bf16.mxu1 %v4114_v24 }
 0x679   : > { %1421 = vmatpush1.bf16.msra.mxu1 %v4112_v25 }
 0x67a   : > { %1422 = vmatprep.subr.bf16.mxu1 %v4117_v33 }
 0x67d   : > { %1423 = vmatpush1.bf16.msra.mxu1 %v4115_v34 }
 0x67e   : > { %1424 = vmatprep.subr.bf16.mxu1 %v4120_v35 }
 0x681   : > { %1425 = vmatpush1.bf16.msra.mxu1 %v4118_v36 }
 0x682   : > { %1426 = vmatprep.subr.bf16.mxu1 %v4123_v37 }
 0x685   : > { %1427 = vmatpush1.bf16.msra.mxu1 %v4121_v38 }
 0x686   : > { %1428 = vmatprep.subr.bf16.mxu1 %v4126_v39 }
 0x689   : > { %1429 = vmatpush1.bf16.msra.mxu1 %v4124_v40 }
 0x6e4   : > { %v988_v44 = vpop.xlane.xlu0 %987 }
 0x6e8   : > { %v766_v11 = vpop.xlane.xlu0 %765 }
 0x6f0   : > { %v877_v41 = vpop.xlane.xlu1 %876 }
 0x6f1   : > { %4263 = vrcp.f32 %v877_v41  ;;  %v4127_v41 = vld [vmem:[#allocation7 + $0x374] ss:$72 sps:$4 sm:$0xff]  }
 0x6f2   : > { %4265 = vrcp.f32 %v988_v44 }
 0x6f4   : > { %v1098_v53 = vpop.xlane.xlu1 %1097 }
 0x6f5   : > { %4267 = vrcp.f32 %v1098_v53 }
 0x6f6   : > { %4269 = vrcp.f32 %v766_v11  ;;  %v4141_v11 = vld [vmem:[#allocation7 + $0x6dc] ss:$72 sps:$4 sm:$0xff]  }
 0x6fb   : > { %v4264_v47 = vpop.eup %4263 }
 0x6fc   : > { %v4266_v56 = vpop.eup %4265 }
 0x6ff   : > { %v4268_v5 = vpop.eup %4267 }
 0x700   : > { %v4270_v12 = vpop.eup %4269 }
 0x701   : > { %v816_v14 = vmul.f32 %v4270_v12, %v4845_v49  ;;  %v3418_v49 = vld [vmem:[#allocation8 + $0x5] ss:$0 sm:$0xff] }
 0x702   : > { %v4142_v12 = vld [vmem:[#allocation7 + $0x25c] ss:$72 sps:$4 sm:$0xff]  }
 0x737   : > { %v922_v48 = vpop.f32.mrb[16].mxu1 }
 0x738   : > { %v929_v50 = vmul.f32 %v4264_v47, %v922_v48  ;;  %v3779_v51 = vpop.f32.mrb[17].mxu1 }
 0x739   : > { %v925_v52 = vpop.f32.mrb[18].mxu1 }
 0x73a   : > { %v3780_v54 = vpop.f32.mrb[19].mxu1  ;;  %1151 = vrot.lane.b32.xlu1 %v929_v50, %s4507_s13 }
 0x73b   : > { %v3427_v54 = vld [vmem:[#allocation8 + $0x6] ss:$0 sm:$0xff] }
 0x73f   : > { %v1032_v57 = vpop.f32.mrb[20].mxu1 }
 0x740   : > { %v1039_v58 = vmul.f32 %v4266_v56, %v1032_v57  ;;  %v3791_v60 = vpop.f32.mrb[21].mxu1  ;;  %v3428_v56 = vld [vmem:[#allocation8 + $0x7] ss:$0 sm:$0xff] }
 0x741   : > { %v1035_v63 = vpop.f32.mrb[22].mxu1 }
 0x742   : > { %1155 = vrot.lane.b32.xlu0 %v1039_v58, %s4510_s6  ;;  %v3792_v3 = vpop.f32.mrb[23].mxu1  ;;  %v4133_v63 = vld [vmem:[#allocation7 + $0x49c] ss:$72 sps:$4 sm:$0xff]  }
 0x743   : > { %v4134_v3 = vld [vmem:[#allocation7 + $0x1c] ss:$72 sps:$4 sm:$0xff]   ;;  %3612 = vmatprep.subr.bf16.mxu0 %v4133_v63 }
 0x747   : > { %v1142_v6 = vpop.f32.mrb[24].mxu1 }
 0x748   : > { %v1149_v7 = vmul.f32 %v4268_v5, %v1142_v6  ;;  %v3803_v8 = vpop.f32.mrb[25].mxu1  ;;  %v4135_v5 = vld [vmem:[#allocation7 + $0x52c] ss:$72 sps:$4 sm:$0xff]  }
 0x749   : > { %v1145_v9 = vpop.f32.mrb[26].mxu1  ;;  %v4136_v6 = vld [vmem:[#allocation7 + $0xac] ss:$72 sps:$4 sm:$0xff]   ;;  %v4138_v8 = vld [vmem:[#allocation7 + $0x13c] ss:$72 sps:$4 sm:$0xff]  }
 0x74a   : > { %v3804_v10 = vpop.f32.mrb[27].mxu1  ;;  %1159 = vrot.lane.b32.xlu1 %v1149_v7, %s4508_s16  ;;  %v4137_v7 = vld [vmem:[#allocation7 + $0x5bc] ss:$72 sps:$4 sm:$0xff]   ;;  %v4139_v9 = vld [vmem:[#allocation7 + $0x64c] ss:$72 sps:$4 sm:$0xff]  }
 0x74b   : > { %v4140_v10 = vld [vmem:[#allocation7 + $0x1cc] ss:$72 sps:$4 sm:$0xff]  }
 0x7ac   : > { %v1152_v13 = vpop.permute.xlu1 %1151 }
 0x7ad   : > { %v1162_v16 = vsel %vm710_vm3, %v816_v14, %v1152_v13  ;;  %v4143_v13 = vld [vmem:[#allocation7 + $0x76c] ss:$72 sps:$4 sm:$0xff]  }
 0x7ae   : > { %v4144_v14 = vld [vmem:[#allocation7 + $0x2ec] ss:$72 sps:$4 sm:$0xff]  }
 0x7b4   : > { %v1156_v15 = vpop.permute.xlu0 %1155 }
 0x7b5   : > { %v1164_v17 = vsel %vm1163_vm7, %v1162_v16, %v1156_v15  ;;  %v4145_v15 = vld [vmem:[#allocation7 + $0x7fc] ss:$72 sps:$4 sm:$0xff]  }
 0x7b6   : > { %v4146_v16 = vld [vmem:[#allocation7 + $0x37c] ss:$72 sps:$4 sm:$0xff]  }
 0x7bc   : > { %v1160_v18 = vpop.permute.xlu1 %1159 }
 0x7bd   : > { %v1166_v19 = vsel %vm1165_vm8, %v1164_v17, %v1160_v18  ;;  %v4147_v17 = vld [vmem:[#allocation7 + $0x88c] ss:$72 sps:$4 sm:$0xff]  }
 0x7be   : > { %v1184_v21 = vpack.c.bf16 %v1166_v19, %v1166_v19  ;;  %v4148_v18 = vld [vmem:[#allocation7 + $0x40c] ss:$72 sps:$4 sm:$0xff]   ;;  %v1325_v19 = vld [vmem:[#allocation8 + $0x8] sm:$0x3] }
 0x7bf   : > { %v1335_v22 = vrot.slane %v1325_v19, %v4789_v62 }
 0x7c0   : > { %3822 = vmatmul.mubr.bf16.vlgmr.msra.gmra.mrb[16].mxu0 %v1184_v21  ;;  %v1331_v21 = vrot.slane %v1325_v19, %v4794_v4  ;;  %v4173_v19 = vld [vmem:[#allocation7 + $0x380] ss:$72 sps:$4 sm:$0xff]  }
 0x7c1   : > { %3613 = vmatpush3.bf16.msra.mxu0 %v4134_v3 }
 0x7c2   : > { %3614 = vmatprep.subr.bf16.mxu0 %v4135_v5 }
 0x7c5   : > { %3615 = vmatpush3.bf16.msra.mxu0 %v4136_v6  ;;  %v4156_v6 = vld [vmem:[#allocation7 + $0xb8] ss:$72 sps:$4 sm:$0xff]  }
 0x7c6   : > { %3616 = vmatprep.subr.bf16.mxu0 %v4137_v7  ;;  %v4159_v7 = vld [vmem:[#allocation7 + $0x144] ss:$72 sps:$4 sm:$0xff]  }
 0x7c9   : > { %3617 = vmatpush3.bf16.msra.mxu0 %v4138_v8  ;;  %v4157_v8 = vld [vmem:[#allocation7 + $0x140] ss:$72 sps:$4 sm:$0xff]  }
 0x7ca   : > { %3618 = vmatprep.subr.bf16.mxu0 %v4139_v9  ;;  %v4160_v9 = vld [vmem:[#allocation7 + $0x148] ss:$72 sps:$4 sm:$0xff]  }
 0x7cd   : > { %3619 = vmatpush3.bf16.msra.mxu0 %v4140_v10  ;;  %v4163_v10 = vld [vmem:[#allocation7 + $0x1d4] ss:$72 sps:$4 sm:$0xff]  }
 0x7ce   : > { %3620 = vmatprep.subr.bf16.mxu0 %v4141_v11  ;;  %v4161_v11 = vld [vmem:[#allocation7 + $0x1d0] ss:$72 sps:$4 sm:$0xff]  }
 0x7d1   : > { %3621 = vmatpush3.bf16.msra.mxu0 %v4142_v12  ;;  %v4164_v12 = vld [vmem:[#allocation7 + $0x1d8] ss:$72 sps:$4 sm:$0xff]  }
 0x7d2   : > { %3622 = vmatprep.subr.bf16.mxu0 %v4143_v13  ;;  %v4165_v13 = vld [vmem:[#allocation7 + $0x260] ss:$72 sps:$4 sm:$0xff]  }
 0x7d5   : > { %3623 = vmatpush3.bf16.msra.mxu0 %v4144_v14  ;;  %v4168_v14 = vld [vmem:[#allocation7 + $0x268] ss:$72 sps:$4 sm:$0xff]  }
 0x7d6   : > { %3624 = vmatprep.subr.bf16.mxu0 %v4145_v15  ;;  %v4171_v15 = vld [vmem:[#allocation7 + $0x2f4] ss:$72 sps:$4 sm:$0xff]  }
 0x7d9   : > { %3625 = vmatpush3.bf16.msra.mxu0 %v4146_v16  ;;  %v4169_v16 = vld [vmem:[#allocation7 + $0x2f0] ss:$72 sps:$4 sm:$0xff]  }
 0x7da   : > { %3626 = vmatprep.subr.bf16.mxu0 %v4147_v17  ;;  %v4172_v17 = vld [vmem:[#allocation7 + $0x2f8] ss:$72 sps:$4 sm:$0xff]  }
 0x7dd   : > { %3627 = vmatpush3.bf16.msra.mxu0 %v4148_v18  ;;  %v4175_v18 = vld [vmem:[#allocation7 + $0x384] ss:$72 sps:$4 sm:$0xff]  }
 0x7de   : > { %3825 = vmatprep.subr.bf16.mxu0 %v4504_v1 }
 0x893   : > { %v1273_v20 = vpop.f32.mrb[16].mxu0 }
 0x894   : > { %v1274_v27 = vadd.f32 %v3418_v49, %v1273_v20  ;;  %v3823_v28 = vpop.f32.mrb[17].mxu0 }
 0x895   : > { %v1276_v29 = vpop.f32.mrb[18].mxu0 }
 0x896   : > { %v1279_v30 = vadd.f32 %v1274_v27, %v4777_v59  ;;  %v3824_v31 = vpop.f32.mrb[19].mxu0  ;;  %v4129_v59 = vld [vmem:[#allocation7 + $0x378] ss:$72 sps:$4 sm:$0xff]  }
 0x897   : > { %1430 = vmatprep.subr.bf16.mxu1 %v4129_v59 }
 0x898   : > { %1282 = vadd.xlane.f32.xlu1 %v1279_v30  ;;  %v1285_v32 = vmul.f32 %v1279_v30, %v1279_v30  ;;  %1431 = vmatpush1.bf16.msra.mxu1 %v4127_v41 }
 0x899   : > { %1432 = vmatprep.subr.bf16.mxu1 %v4132_v42 }
 0x89a   : > { %1286 = vadd.xlane.f32.xlu0 %v1285_v32 }
 0x89c   : > { %1433 = vmatpush1.bf16.msra.mxu1 %v4130_v43 }
 0x925   : > { %v1283_v44 = vpop.xlane.xlu1 %1282 }
 0x926   : > { %v1284_v45 = vmul.f32 0.0078125, %v1283_v44 }
 0x927   : > { %v1287_v46 = vpop.xlane.xlu0 %1286 }
 0x928   : > { %v1289_v47 = vmul.f32 %v1284_v45, %v1284_v45  ;;  %v1288_v48 = vmul.f32 0.0078125, %v1287_v46  ;;  %v1291_v52 = vsub.f32 %v1279_v30, %v1284_v45 }
 0x92a   : > { %v1290_v50 = vsub.f32 %v1288_v48, %v1289_v47  ;;  %v4149_v47 = vld [vmem:[#allocation7 + $0x20] ss:$72 sps:$4 sm:$0xff]   ;;  %v4151_v48 = vld [vmem:[#allocation7 + $0x24] ss:$72 sps:$4 sm:$0xff]  }
 0x92b   : > { %1862 = vmatprep.subr.bf16.mxu1 %v4151_v48 }
 0x92c   : > { %v1292_v51 = vadd.f32 1e-05, %v1290_v50  ;;  %v4152_v50 = vld [vmem:[#allocation7 + $0x28] ss:$72 sps:$4 sm:$0xff]  }
 0x92e   : > { %4271 = vrsqrt.f32 %v1292_v51  ;;  %v4155_v51 = vld [vmem:[#allocation7 + $0xb4] ss:$72 sps:$4 sm:$0xff]  }
 0x938   : > { %v4272_v53 = vpop.eup %4271 }
 0x939   : > { %v1294_v55 = vmul.f32 %v4272_v53, %v1291_v52  ;;  %v4153_v52 = vld [vmem:[#allocation7 + $0xb0] ss:$72 sps:$4 sm:$0xff]  }
 0x93b   : > { %v1301_v57 = vmul.f32 %v3427_v54, %v1294_v55  ;;  %v3445_v54 = vld [vmem:[#allocation8 + $0xa] ss:$0 sm:$0xff] }
 0x93d   : > { %v4891_v58 = vadd.f32 %v3428_v56, %v1301_v57 }
 0x93f   : > { %v1326_v60 = vpack.c.bf16 %v4891_v58, %v4891_v58 }
 0x941   : > { %1451 = vmatmul.mubr.bf16.vlgmr.msra.gmra.mrb[28].mxu1 %v1326_v60 }
 0x942   : > { %1894 = vmatprep.mubr.bf16.mxu1 %v4503_v0  ;;  %1863 = vmatpush1.bf16.msra.mxu1 %v4149_v47 }
 0x943   : > { %1864 = vmatprep.subr.bf16.mxu1 %v4155_v51 }
 0x946   : > { %1865 = vmatpush1.bf16.msra.mxu1 %v4153_v52 }
 0x947   : > { %1866 = vmatprep.subr.bf16.mxu1 %v4159_v7 }
 0x94a   : > { %1867 = vmatpush1.bf16.msra.mxu1 %v4157_v8 }
 0x94b   : > { %1868 = vmatprep.subr.bf16.mxu1 %v4163_v10 }
 0x94e   : > { %1869 = vmatpush1.bf16.msra.mxu1 %v4161_v11 }
 0xa14   : > { %v1452_v23 = vpop.f32.mrb[28].mxu1 }
 0xa15   : > { %v1453_v24 = vadd.f32 %v1452_v23, %v1331_v21  ;;  %v1454_v25 = vpop.f32.mrb[29].mxu1  ;;  %v4176_v21 = vld [vmem:[#allocation7 + $0x388] ss:$72 sps:$4 sm:$0xff]  }
 0xa16   : > { %v1455_v49 = vadd.f32 %v1454_v25, %v1335_v22  ;;  %v1456_v20 = vpop.f32.mrb[30].mxu1  ;;  %v4179_v22 = vld [vmem:[#allocation7 + $0x414] ss:$72 sps:$4 sm:$0xff]   ;;  %v4177_v23 = vld [vmem:[#allocation7 + $0x410] ss:$72 sps:$4 sm:$0xff]  }
 0xa17   : > { %v1459_v27 = vmul.f32 %v1453_v24, %v1453_v24  ;;  %v1457_v28 = vpop.f32.mrb[31].mxu1 }
 0xa18   : > { %v1460_v29 = vmul.f32 %v1455_v49, %v1455_v49 }
 0xa19   : > { %v1461_v30 = vmul.f32 %v1459_v27, %v1453_v24 }
 0xa1a   : > { %v1462_v31 = vmul.f32 %v1460_v29, %v1455_v49 }
 0xa1b   : > { %v1463_v32 = vmul.f32 0.044715, %v1461_v30 }
 0xa1c   : > { %v1464_v33 = vmul.f32 0.044715, %v1462_v31 }
 0xa1d   : > { %v1465_v34 = vadd.f32 %v1463_v32, %v1453_v24 }
 0xa1e   : > { %v1466_v35 = vadd.f32 %v1464_v33, %v1455_v49  ;;  %v3462_v33 = vld [vmem:[#allocation8 + $0xb] ss:$0 sm:$0xff] }
 0xa1f   : > { %v1467_v36 = vmul.f32 0.7978846, %v1465_v34 }
 0xa20   : > { %v1468_v37 = vmul.f32 0.7978846, %v1466_v35  ;;  %v3463_v35 = vld [vmem:[#allocation8 + $0xc] ss:$0 sm:$0xff] }
 0xa21   : > { %4273 = vtanh.f32 %v1467_v36 }
 0xa22   : > { %4275 = vtanh.f32 %v1468_v37 }
 0xa2b   : > { %v4274_v38 = vpop.eup %4273 }
 0xa2c   : > { %v4276_v39 = vpop.eup %4275  ;;  %v1471_v40 = vadd.f32 1.0, %v4274_v38 }
 0xa2d   : > { %v1472_v59 = vadd.f32 1.0, %v4276_v39  ;;  %v1716_v39 = vld [vmem:[#allocation8 + $0xd] sm:$0x7] }
 0xa2e   : > { %v1473_v41 = vmul.f32 0.5, %v1471_v40  ;;  %v1726_v40 = vrot.slane %v1716_v39, %v4789_v62  ;;  %v1722_v51 = vrot.slane %v1716_v39, %v4794_v4 }
 0xa2f   : > { %v1474_v42 = vmul.f32 0.5, %v1472_v59 }
 0xa30   : > { %v1475_v43 = vmul.f32 %v1473_v41, %v1453_v24  ;;  %v4180_v24 = vld [vmem:[#allocation7 + $0x418] ss:$72 sps:$4 sm:$0xff]  }
 0xa31   : > { %v1476_v44 = vmul.f32 %v1474_v42, %v1455_v49 }
 0xa32   : > { %v1510_v46 = vpack.c.bf16 %v1475_v43, %v1475_v43 }
 0xa33   : > { %v1511_v45 = vpack.c.bf16 %v1476_v44, %v1476_v44  ;;  %v1730_v44 = vrot.slane %v1716_v39, %v487_v2 }
 0xa35   : > { %1646 = vmatprep.mubr.bf16.mxu0 %v1511_v45 }
 0xa36   : > { %1647 = vmatmul.mubr.bf16.vlgmr.msra.gmra.mrb[20].mxu0 %v1510_v46 }
 0xa37   : > { %3841 = vmatprep.mubr.msk.bf16.mxu0 %vm4505_vm0, %v4504_v1  ;;  %3826 = vmatpush3.bf16.msra.mxu0 %v4152_v50 }
 0xa38   : > { %3827 = vmatprep.subr.bf16.mxu0 %v4504_v1 }
 0xa3b   : > { %3828 = vmatpush3.bf16.msra.mxu0 %v4156_v6 }
 0xa3c   : > { %3829 = vmatprep.subr.bf16.mxu0 %v4504_v1 }
 0xa3f   : > { %3830 = vmatpush3.bf16.msra.mxu0 %v4160_v9 }
 0xa40   : > { %3831 = vmatprep.subr.bf16.mxu0 %v4504_v1 }
 0xa43   : > { %3832 = vmatpush3.bf16.msra.mxu0 %v4164_v12 }
 0xa44   : > { %3833 = vmatprep.subr.bf16.mxu0 %v4504_v1 }
 0xa47   : > { %3834 = vmatpush3.bf16.msra.mxu0 %v4168_v14 }
 0xa48   : > { %3835 = vmatprep.subr.bf16.mxu0 %v4504_v1 }
 0xa4b   : > { %3836 = vmatpush3.bf16.msra.mxu0 %v4172_v17 }
 0xa4c   : > { %3837 = vmatprep.subr.bf16.mxu0 %v4504_v1 }
 0xa4f   : > { %3838 = vmatpush3.bf16.msra.mxu0 %v4176_v21 }
 0xa50   : > { %3839 = vmatprep.subr.bf16.mxu0 %v4504_v1 }
 0xa53   : > { %3840 = vmatpush3.bf16.msra.mxu0 %v4180_v24 }
 0xa54   : > { %3869 = vmatprep.subr.bf16.mxu0 %v4504_v1 }
 0xb09   : > { %v3628_v53 = vpop.f32.mrb[20].mxu0 }
 0xb0a   : > { %v3629_v55 = vpop.f32.mrb[21].mxu0 }
 0xb0b   : > { %v3630_v56 = vadd.f32 %v3629_v55, %v3628_v53  ;;  %v3631_v57 = vpop.f32.mrb[22].mxu0 }
 0xb0c   : > { %v3632_v60 = vpop.f32.mrb[23].mxu0 }
 0xb0d   : > { %v1649_v63 = vadd.f32 %v3630_v56, %v3445_v54 }
 0xb0f   : > { %v1654_v3 = vadd.f32 %v1649_v63, %v4891_v58  ;;  %v4167_v58 = vld [vmem:[#allocation7 + $0x264] ss:$72 sps:$4 sm:$0xff]  }
 0xb10   : > { %1870 = vmatprep.subr.bf16.mxu1 %v4167_v58 }
 0xb11   : > { %1657 = vadd.xlane.f32.xlu0 %v1654_v3  ;;  %v1660_v5 = vmul.f32 %v1654_v3, %v1654_v3  ;;  %1871 = vmatpush1.bf16.msra.mxu1 %v4165_v13 }
 0xb12   : > { %1872 = vmatprep.subr.bf16.mxu1 %v4171_v15 }
 0xb13   : > { %1661 = vadd.xlane.f32.xlu1 %v1660_v5 }
 0xb15   : > { %1873 = vmatpush1.bf16.msra.mxu1 %v4169_v16 }
 0xb16   : > { %1874 = vmatprep.subr.bf16.mxu1 %v4175_v18 }
 0xb19   : > { %1875 = vmatpush1.bf16.msra.mxu1 %v4173_v19 }
 0xb1a   : > { %1876 = vmatprep.subr.bf16.mxu1 %v4179_v22 }
 0xb1d   : > { %1877 = vmatpush1.bf16.msra.mxu1 %v4177_v23 }
 0xb1e   : > { %3845 = vmatprep.subr.bf16.mxu1 %v4504_v1 }
 0xb9e   : > { %v1658_v25 = vpop.xlane.xlu0 %1657 }
 0xb9f   : > { %v1659_v49 = vmul.f32 0.0078125, %v1658_v25 }
 0xba0   : > { %v1662_v20 = vpop.xlane.xlu1 %1661 }
 0xba1   : > { %v1664_v27 = vmul.f32 %v1659_v49, %v1659_v49  ;;  %v1663_v28 = vmul.f32 0.0078125, %v1662_v20  ;;  %v1666_v31 = vsub.f32 %v1654_v3, %v1659_v49 }
 0xba3   : > { %v1665_v29 = vsub.f32 %v1663_v28, %v1664_v27 }
 0xba5   : > { %v1667_v30 = vadd.f32 1e-05, %v1665_v29 }
 0xba7   : > { %4277 = vrsqrt.f32 %v1667_v30 }
 0xbb1   : > { %v4278_v32 = vpop.eup %4277 }
 0xbb2   : > { %v1669_v34 = vmul.f32 %v4278_v32, %v1666_v31 }
 0xbb4   : > { %v1676_v36 = vmul.f32 %v3462_v33, %v1669_v34 }
 0xbb6   : > { %v4911_v37 = vadd.f32 %v3463_v35, %v1676_v36 }
 0xbb8   : > { %v1717_v38 = vpack.c.bf16 %v4911_v37, %v4911_v37 }
 0xbba   : > { %1895 = vmatmul.mubr.bf16.vlgmr.msra.gmra.mrb[32].mxu1 %v1717_v38  ;;  %3842 = vmatmul.mubr.bf16.vlgmr.msra.gmra.mrb[24].mxu0 %v1717_v38 }
 0xbbb   : > { %3847 = vmatprep.mubr.msk.bf16.mxu1 %vm4505_vm0, %v4504_v1  ;;  %3871 = vmatprep.mubr.msk.bf16.mxu0 %vm4505_vm0, %v4504_v1 }
 0xc8d   : > { %v1896_v59 = vpop.f32.mrb[32].mxu1  ;;  %v1937_v41 = vpop.f32.mrb[24].mxu0 }
 0xc8e   : > { %v1898_v42 = vpop.f32.mrb[33].mxu1  ;;  %v3843_v43 = vpop.f32.mrb[25].mxu0  ;;  %v1938_v53 = vadd.f32 %v1937_v41, %v1730_v44  ;;  %v1897_v55 = vadd.f32 %v1896_v59, %v1722_v51 }
 0xc8f   : > { %v1899_v45 = vadd.f32 %v1898_v42, %v1726_v40  ;;  %v1900_v46 = vpop.f32.mrb[34].mxu1  ;;  %v1940_v47 = vpop.f32.mrb[26].mxu0 }
 0xc90   : > { %v1901_v48 = vpop.f32.mrb[35].mxu1  ;;  %v3844_v50 = vpop.f32.mrb[27].mxu0  ;;  %v4926_v56 = vpack.c.bf16 %v1938_v53, %v1938_v53  ;;  %v1943_v61 = vpack.c.bf16 %v1897_v55, %v1897_v55 }
 0xc91   : > { %v1944_v52 = vpack.c.bf16 %v1899_v45, %v1899_v45 }
 0xc92   : > { %v2006_v2 = vsel %vm771_vm4, %v4926_v56, 0 }
 0xc93   : > { %2054 = vrot.lane.b32.xlu1 %v1944_v52, %s4508_s16  ;;  %v1950_v54 = vsel %vm710_vm3, %v1944_v52, 0 }
 0xc94   : > { %3846 = vmatpush3.bf16.xpose.msra.mxu1 %v1950_v54 }
 0xc95   : > { %3851 = vmatprep.subr.bf16.mxu1 %v4504_v1 }
 0xc97   : > { %2165 = vrot.lane.b32.xlu1 %v1944_v52, %s4510_s6 }
 0xc9b   : > { %2163 = vrot.lane.b32.xlu1 %v1943_v61, %s4510_s6  ;;  %3848 = vmatmul.mubr.msk.bf16.vlgmr.msra.gmra.mrb[36].mxu1 %vm710_vm3, %v1943_v61 }
 0xc9c   : > { %3852 = vmatpush3.bf16.msra.mxu1 %v2006_v2  ;;  %3853 = vmatprep.mubr.msk.bf16.mxu1 %vm4505_vm0, %v4504_v1 }
 0xc9d   : > { %3857 = vmatprep.subr.bf16.mxu1 %v4504_v1 }
 0xc9f   : > { %2273 = vrot.lane.b32.xlu1 %v1943_v61, %s4507_s13 }
 0xd05   : > { %v2055_v57 = vpop.permute.xlu1 %2054 }
 0xd06   : > { %v2060_v49 = vsel %vm710_vm3, %v2055_v57, 0 }
 0xd09   : > { %v2166_v60 = vpop.permute.xlu1 %2165 }
 0xd0a   : > { %v2171_v63 = vsel %vm710_vm3, %v2166_v60, 0 }
 0xd0b   : > { %3870 = vmatpush3.bf16.xpose.msra.mxu0 %v2171_v63 }
 0xd0c   : > { %3881 = vmatprep.subr.bf16.mxu0 %v4504_v1 }
 0xd0d   : > { %v2164_v3 = vpop.permute.xlu1 %2163 }
 0xd11   : > { %v2274_v24 = vpop.permute.xlu1 %2273 }
 0xd12   : > { %3872 = vmatmul.mubr.msk.bf16.vlgmr.msra.gmra.mrb[28].mxu0 %vm710_vm3, %v2164_v3 }
 0xd13   : > { %3883 = vmatprep.mubr.msk.bf16.mxu0 %vm4505_vm0, %v4504_v1 }
 0xd6e   : > { %v1986_v5 = vpop.f32.mrb[36].mxu1 }
 0xd6f   : > { %v1987_v6 = vadd.f32 %v1986_v5, %v4814_v26  ;;  %v3849_v7 = vpop.f32.mrb[37].mxu1 }
 0xd70   : > { %v1989_v8 = vpop.f32.mrb[38].mxu1 }
 0xd71   : > { %v3850_v9 = vpop.f32.mrb[39].mxu1  ;;  %v1992_v10 = vsel %vm757_vm6, %v1987_v6, -inf }
 0xd72   : > { %1993 = vmax.xlane.f32.xlu0 %v1992_v10  ;;  %v4181_v9 = vld [vmem:[#allocation7 + $0x2c] ss:$72 sps:$4 sm:$0xff]   ;;  %v4182_v10 = vld [vmem:[#allocation7 + $0xbc] ss:$72 sps:$4 sm:$0xff]  }
 0xd88   : > { %2051 = vrot.lane.b32.xlu0 %v1943_v61, %s4508_s16 }
 0xd8c   : > { %2275 = vrot.lane.b32.xlu0 %v1944_v52, %s4507_s13 }
 0xde5   : > { %v2207_v11 = vpop.f32.mrb[28].mxu0 }
 0xde6   : > { %v2208_v12 = vadd.f32 %v2207_v11, %v4814_v26  ;;  %v3873_v58 = vpop.f32.mrb[29].mxu0  ;;  %v4183_v11 = vld [vmem:[#allocation7 + $0x14c] ss:$72 sps:$4 sm:$0xff]  }
 0xde7   : > { %v2210_v13 = vpop.f32.mrb[30].mxu0  ;;  %v4184_v58 = vld [vmem:[#allocation7 + $0x1dc] ss:$72 sps:$4 sm:$0xff]  }
 0xde8   : > { %v3874_v14 = vpop.f32.mrb[31].mxu0  ;;  %v2213_v15 = vsel %vm757_vm6, %v2208_v12, -inf  ;;  %v4185_v13 = vld [vmem:[#allocation7 + $0x26c] ss:$72 sps:$4 sm:$0xff]  }
 0xde9   : > { %2214 = vmax.xlane.f32.xlu1 %v2213_v15  ;;  %v4186_v14 = vld [vmem:[#allocation7 + $0x2fc] ss:$72 sps:$4 sm:$0xff]   ;;  %v4187_v15 = vld [vmem:[#allocation7 + $0x38c] ss:$72 sps:$4 sm:$0xff]  }
 0xdfa   : > { %2223 = vrot.lane.b32.xlu1 %v4926_v56, %s4510_s6 }
 0xdfe   : > { %2333 = vrot.lane.b32.xlu1 %v4926_v56, %s4507_s13 }
 0xdff   : > { %v1994_v16 = vpop.xlane.xlu0 %1993 }
 0xe00   : > { %v1995_v17 = vsub.f32 %v1987_v6, %v1994_v16 }
 0xe02   : > { %v1996_v18 = vmul.f32 1.442695, %v1995_v17 }
 0xe03   : > { %v2052_v19 = vpop.permute.xlu0 %2051 }
 0xe04   : > { %4279 = vpow2.f32 %v1996_v18 }
 0xe07   : > { %v2276_v21 = vpop.permute.xlu0 %2275 }
 0xe08   : > { %v2281_v22 = vsel %vm710_vm3, %v2276_v21, 0 }
 0xe09   : > { %3882 = vmatpush3.bf16.xpose.msra.mxu0 %v2281_v22 }
 0xe0a   : > { %3893 = vmatprep.subr.bf16.mxu0 %v4504_v1 }
 0xe0e   : > { %v4954_v23 = vpop.eup %4279 }
 0xe0f   : > { %v2001_v25 = vpack.c.bf16 %v4954_v23, %v4954_v23  ;;  %v1998_v5 = vsel %vm757_vm6, %v4954_v23, 0.0 }
 0xe10   : > { %3884 = vmatmul.mubr.msk.bf16.vlgmr.msra.gmra.mrb[32].mxu0 %vm710_vm3, %v2274_v24  ;;  %v4188_v24 = vld [vmem:[#allocation7 + $0x41c] ss:$72 sps:$4 sm:$0xff]  }
 0xe11   : > { %3854 = vmatmul.mubr.msk.bf16.vlgmr.msra.gmra.mrb[40].mxu1 %vm757_vm6, %v2001_v25  ;;  %3909 = vmatprep.mubr.msk.bf16.mxu0 %vm4505_vm0, %v4504_v1 }
 0xe12   : > { %3858 = vmatpush3.bf16.xpose.msra.mxu1 %v2060_v49  ;;  %3859 = vmatprep.mubr.msk.bf16.mxu1 %vm4505_vm0, %v4504_v1 }
 0xe13   : > { %3863 = vmatprep.subr.bf16.mxu1 %v4504_v1  ;;  %3894 = vmatpush3.bf16.msra.mxu0 %v4181_v9  ;;  %v4212_v9 = vld [vmem:[#allocation7 + $0x424] ss:$72 sps:$4 sm:$0xff]  }
 0xe14   : > { %3895 = vmatprep.subr.bf16.mxu0 %v4504_v1 }
 0xe17   : > { %3896 = vmatpush3.bf16.msra.mxu0 %v4182_v10  ;;  %v4210_v10 = vld [vmem:[#allocation7 + $0x420] ss:$72 sps:$4 sm:$0xff]  }
 0xe18   : > { %3897 = vmatprep.subr.bf16.mxu0 %v4504_v1 }
 0xe19   : > { %3860 = vmatmul.mubr.msk.bf16.vlgmr.msra.gmra.mrb[44].mxu1 %vm710_vm3, %v2052_v19 }
 0xe1a   : > { %3865 = vmatprep.mubr.msk.bf16.mxu1 %vm4505_vm0, %v4504_v1 }
 0xe1b   : > { %3898 = vmatpush3.bf16.msra.mxu0 %v4183_v11 }
 0xe1c   : > { %3899 = vmatprep.subr.bf16.mxu0 %v4504_v1 }
 0xe1f   : > { %3900 = vmatpush3.bf16.msra.mxu0 %v4184_v58 }
 0xe20   : > { %3901 = vmatprep.subr.bf16.mxu0 %v4504_v1 }
 0xe23   : > { %3902 = vmatpush3.bf16.msra.mxu0 %v4185_v13 }
 0xe24   : > { %3903 = vmatprep.subr.bf16.mxu0 %v4504_v1 }
 0xe27   : > { %3904 = vmatpush3.bf16.msra.mxu0 %v4186_v14 }
 0xe28   : > { %3905 = vmatprep.subr.bf16.mxu0 %v4504_v1 }
 0xe2b   : > { %3906 = vmatpush3.bf16.msra.mxu0 %v4187_v15 }
 0xe2c   : > { %3907 = vmatprep.subr.bf16.mxu0 %v4504_v1 }
 0xe2f   : > { %3908 = vmatpush3.bf16.msra.mxu0 %v4188_v24 }
 0xe76   : > { %v2215_v20 = vpop.xlane.xlu1 %2214 }
 0xe77   : > { %v2216_v27 = vsub.f32 %v2208_v12, %v2215_v20 }
 0xe79   : > { %v2217_v28 = vmul.f32 1.442695, %v2216_v27 }
 0xe7a   : > { %v2224_v61 = vpop.permute.xlu1 %2223 }
 0xe7b   : > { %4281 = vpow2.f32 %v2217_v28  ;;  %v2229_v60 = vsel %vm771_vm4, %v2224_v61, 0 }
 0xe7e   : > { %v2334_v3 = vpop.permute.xlu1 %2333 }
 0xe7f   : > { %v2339_v7 = vsel %vm771_vm4, %v2334_v3, 0  ;;  %v4203_v3 = vld [vmem:[#allocation7 + $0x274] ss:$72 sps:$4 sm:$0xff]  }
 0xe85   : > { %v4282_v29 = vpop.eup %4281 }
 0xe86   : > { %v2219_v30 = vsel %vm757_vm6, %v4282_v29, 0.0  ;;  %v2222_v6 = vpack.c.bf16 %v4282_v29, %v4282_v29 }
 0xe87   : > { %2220 = vadd.xlane.f32.xlu1 %v2219_v30 }
 0xee3   : > { %v2317_v31 = vpop.f32.mrb[32].mxu0 }
 0xee4   : > { %v2318_v32 = vadd.f32 %v2317_v31, %v4814_v26  ;;  %v4971_v33 = vpop.f32.mrb[40].mxu1  ;;  %v3885_v34 = vpop.f32.mrb[33].mxu0 }
 0xee5   : > { %v3855_v35 = vpop.f32.mrb[41].mxu1  ;;  %v2320_v36 = vpop.f32.mrb[34].mxu0 }
 0xee6   : > { %v2045_v38 = vpop.f32.mrb[42].mxu1  ;;  %v3886_v39 = vpop.f32.mrb[35].mxu0  ;;  %v2323_v40 = vsel %vm757_vm6, %v2318_v32, -inf }
 0xee7   : > { %2324 = vmax.xlane.f32.xlu0 %v2323_v40  ;;  %v3856_v59 = vpop.f32.mrb[43].mxu1 }
 0xeec   : > { %v2096_v41 = vpop.f32.mrb[44].mxu1 }
 0xeed   : > { %v2097_v42 = vadd.f32 %v2096_v41, %v4814_v26  ;;  %v3861_v43 = vpop.f32.mrb[45].mxu1 }
 0xeee   : > { %v2099_v44 = vpop.f32.mrb[46].mxu1 }
 0xeef   : > { %v3862_v45 = vpop.f32.mrb[47].mxu1  ;;  %v2102_v46 = vsel %vm757_vm6, %v2097_v42, -inf }
 0xef0   : > { %2103 = vmax.xlane.f32.xlu0 %v2102_v46 }
 0xf06   : > { %2113 = vrot.lane.b32.xlu0 %v4926_v56, %s4508_s16 }
 0xf74   : > { %v2325_v47 = vpop.xlane.xlu0 %2324 }
 0xf75   : > { %v2326_v48 = vsub.f32 %v2318_v32, %v2325_v47  ;;  %v4189_v47 = vld [vmem:[#allocation7 + $0x30] ss:$72 sps:$4 sm:$0xff]  }
 0xf77   : > { %v2327_v52 = vmul.f32 1.442695, %v2326_v48  ;;  %v4191_v48 = vld [vmem:[#allocation7 + $0x34] ss:$72 sps:$4 sm:$0xff]  }
 0xf7d   : > { %v2104_v50 = vpop.xlane.xlu0 %2103 }
 0xf7e   : > { %v2105_v51 = vsub.f32 %v2097_v42, %v2104_v50  ;;  %v4194_v50 = vld [vmem:[#allocation7 + $0xc4] ss:$72 sps:$4 sm:$0xff]  }
 0xf80   : > { %v2106_v53 = vmul.f32 1.442695, %v2105_v51  ;;  %v4192_v51 = vld [vmem:[#allocation7 + $0xc0] ss:$72 sps:$4 sm:$0xff]  }
 0xf81   : > { %v2114_v54 = vpop.permute.xlu0 %2113 }
 0xf82   : > { %4283 = vpow2.f32 %v2106_v53  ;;  %v2119_v55 = vsel %vm771_vm4, %v2114_v54, 0 }
 0xf83   : > { %3864 = vmatpush3.bf16.msra.mxu1 %v2119_v55  ;;  %4285 = vpow2.f32 %v2327_v52  ;;  %v3496_v52 = vld [vmem:[#allocation8 + $0x10] ss:$0 sm:$0xff] }
 0xf84   : > { %3875 = vmatprep.subr.bf16.mxu1 %v4504_v1 }
 0xf8c   : > { %v4284_v26 = vpop.eup %4283 }
 0xf8d   : > { %v2108_v2 = vsel %vm757_vm6, %v4284_v26, 0.0  ;;  %v2111_v57 = vpack.c.bf16 %v4284_v26, %v4284_v26  ;;  %v4286_v56 = vpop.eup %4285 }
 0xf8e   : > { %2109 = vadd.xlane.f32.xlu0 %v2108_v2  ;;  %v2329_v63 = vsel %vm757_vm6, %v4286_v56, 0.0  ;;  %v2332_v8 = vpack.c.bf16 %v4286_v56, %v4286_v56  ;;  %v4195_v56 = vld [vmem:[#allocation7 + $0x150] ss:$72 sps:$4 sm:$0xff]  }
 0xf8f   : > { %3866 = vmatmul.mubr.msk.bf16.vlgmr.msra.gmra.mrb[48].mxu1 %vm757_vm6, %v2111_v57  ;;  %v4197_v57 = vld [vmem:[#allocation7 + $0x154] ss:$72 sps:$4 sm:$0xff]  }
 0xf90   : > { %3876 = vmatpush3.bf16.msra.mxu1 %v2229_v60  ;;  %3877 = vmatprep.mubr.msk.bf16.mxu1 %vm4505_vm0, %v4504_v1  ;;  %v4200_v60 = vld [vmem:[#allocation7 + $0x1e4] ss:$72 sps:$4 sm:$0xff]  }
 0xf91   : > { %3887 = vmatprep.subr.bf16.mxu1 %v4504_v1 }
 0xf92   : > { %2330 = vadd.xlane.f32.xlu0 %v2329_v63  ;;  %v4198_v63 = vld [vmem:[#allocation7 + $0x1e0] ss:$72 sps:$4 sm:$0xff]  }
 0xf96   : > { %1999 = vadd.xlane.f32.xlu0 %v1998_v5  ;;  %v4201_v5 = vld [vmem:[#allocation7 + $0x270] ss:$72 sps:$4 sm:$0xff]  }
 0xf97   : > { %3878 = vmatmul.mubr.msk.bf16.vlgmr.msra.gmra.mrb[52].mxu1 %vm757_vm6, %v2222_v6  ;;  %v4206_v6 = vld [vmem:[#allocation7 + $0x304] ss:$72 sps:$4 sm:$0xff]  }
 0xf98   : > { %3888 = vmatpush3.bf16.msra.mxu1 %v2339_v7  ;;  %3889 = vmatprep.mubr.msk.bf16.mxu1 %vm4505_vm0, %v4504_v1  ;;  %v4204_v7 = vld [vmem:[#allocation7 + $0x300] ss:$72 sps:$4 sm:$0xff]  }
 0xf99   : > { %2649 = vmatprep.subr.bf16.mxu1 %v4191_v48 }
 0xf9f   : > { %3890 = vmatmul.mubr.msk.bf16.vlgmr.msra.gmra.mrb[56].mxu1 %vm757_vm6, %v2332_v8  ;;  %v4207_v8 = vld [vmem:[#allocation7 + $0x390] ss:$72 sps:$4 sm:$0xff]  }
 0xfa0   : > { %2681 = vmatprep.mubr.bf16.mxu1 %v4503_v0  ;;  %v2221_v0 = vpop.xlane.xlu1 %2220  ;;  %2650 = vmatpush1.bf16.msra.mxu1 %v4189_v47 }
 0xfa1   : > { %2651 = vmatprep.subr.bf16.mxu1 %v4194_v50 }
 0xfa4   : > { %2652 = vmatpush1.bf16.msra.mxu1 %v4192_v51 }
 0xfa5   : > { %2653 = vmatprep.subr.bf16.mxu1 %v4197_v57 }
 0xfa8   : > { %2654 = vmatpush1.bf16.msra.mxu1 %v4195_v56 }
 0xfa9   : > { %2655 = vmatprep.subr.bf16.mxu1 %v4200_v60 }
 0xfac   : > { %2656 = vmatpush1.bf16.msra.mxu1 %v4198_v63 }
 0xfad   : > { %2657 = vmatprep.subr.bf16.mxu1 %v4203_v3 }
 0xfb0   : > { %2658 = vmatpush1.bf16.msra.mxu1 %v4201_v5 }
 0xfb1   : > { %2659 = vmatprep.subr.bf16.mxu1 %v4206_v6 }
 0xfb4   : > { %2660 = vmatpush1.bf16.msra.mxu1 %v4204_v7 }
0x101b   : > { %v2110_v12 = vpop.xlane.xlu0 %2109 }
0x101c   : > { %4287 = vrcp.f32 %v2110_v12 }
0x101d   : > { %4289 = vrcp.f32 %v2221_v0 }
0x101f   : > { %v2331_v22 = vpop.xlane.xlu0 %2330 }
0x1020   : > { %4291 = vrcp.f32 %v2331_v22 }
0x1023   : > { %v2000_v38 = vpop.xlane.xlu0 %1999 }
0x1024   : > { %4293 = vrcp.f32 %v2000_v38  ;;  %v4225_v38 = vld [vmem:[#allocation7 + $0x818] ss:$72 sps:$4 sm:$0xff]  }
0x1026   : > { %v4288_v16 = vpop.eup %4287 }
0x1027   : > { %v4290_v25 = vpop.eup %4289 }
0x102a   : > { %v4292_v30 = vpop.eup %4291 }
0x102e   : > { %v4294_v39 = vpop.eup %4293 }
0x102f   : > { %v2049_v59 = vmul.f32 %v4294_v39, %v4971_v33  ;;  %v4226_v39 = vld [vmem:[#allocation7 + $0x398] ss:$72 sps:$4 sm:$0xff]  }
0x1062   : > { %v2155_v17 = vpop.f32.mrb[48].mxu1 }
0x1063   : > { %v2162_v18 = vmul.f32 %v4288_v16, %v2155_v17  ;;  %v3867_v19 = vpop.f32.mrb[49].mxu1 }
0x1064   : > { %v2158_v21 = vpop.f32.mrb[50].mxu1 }
0x1065   : > { %2384 = vrot.lane.b32.xlu1 %v2162_v18, %s4507_s13  ;;  %v3868_v23 = vpop.f32.mrb[51].mxu1  ;;  %v3505_v18 = vld [vmem:[#allocation8 + $0x11] ss:$0 sm:$0xff]  ;;  %v3506_v21 = vld [vmem:[#allocation8 + $0x12] ss:$0 sm:$0xff] }
0x106a   : > { %v2265_v49 = vpop.f32.mrb[52].mxu1 }
0x106b   : > { %v2272_v20 = vmul.f32 %v4290_v25, %v2265_v49  ;;  %v3879_v27 = vpop.f32.mrb[53].mxu1  ;;  %v4213_v25 = vld [vmem:[#allocation7 + $0x4b8] ss:$72 sps:$4 sm:$0xff]  }
0x106c   : > { %v2268_v28 = vpop.f32.mrb[54].mxu1  ;;  %v4214_v49 = vld [vmem:[#allocation7 + $0x38] ss:$72 sps:$4 sm:$0xff]   ;;  %3668 = vmatprep.subr.bf16.mxu0 %v4213_v25  ;;  %v4216_v27 = vld [vmem:[#allocation7 + $0xc8] ss:$72 sps:$4 sm:$0xff]  }
0x106d   : > { %2388 = vrot.lane.b32.xlu0 %v2272_v20, %s4510_s6  ;;  %v3880_v29 = vpop.f32.mrb[55].mxu1  ;;  %v4215_v20 = vld [vmem:[#allocation7 + $0x548] ss:$72 sps:$4 sm:$0xff]   ;;  %v4217_v28 = vld [vmem:[#allocation7 + $0x5d8] ss:$72 sps:$4 sm:$0xff]  }
0x106e   : > { %v4218_v29 = vld [vmem:[#allocation7 + $0x158] ss:$72 sps:$4 sm:$0xff]  }
0x106f   : > { %v4238_v25 = vld [vmem:[#allocation7 + $0xd0] ss:$72 sps:$4 sm:$0xff]  }
0x1072   : > { %v2375_v31 = vpop.f32.mrb[56].mxu1 }
0x1073   : > { %v2382_v32 = vmul.f32 %v4292_v30, %v2375_v31  ;;  %v3891_v34 = vpop.f32.mrb[57].mxu1  ;;  %v4219_v30 = vld [vmem:[#allocation7 + $0x668] ss:$72 sps:$4 sm:$0xff]  }
0x1074   : > { %v2378_v35 = vpop.f32.mrb[58].mxu1  ;;  %v4220_v31 = vld [vmem:[#allocation7 + $0x1e8] ss:$72 sps:$4 sm:$0xff]   ;;  %v4222_v34 = vld [vmem:[#allocation7 + $0x278] ss:$72 sps:$4 sm:$0xff]  }
0x1075   : > { %2392 = vrot.lane.b32.xlu1 %v2382_v32, %s4508_s16  ;;  %v3892_v36 = vpop.f32.mrb[59].mxu1  ;;  %v4221_v32 = vld [vmem:[#allocation7 + $0x6f8] ss:$72 sps:$4 sm:$0xff]   ;;  %v4223_v35 = vld [vmem:[#allocation7 + $0x788] ss:$72 sps:$4 sm:$0xff]  }
0x1076   : > { %v4224_v36 = vld [vmem:[#allocation7 + $0x308] ss:$72 sps:$4 sm:$0xff]  }
0x10d7   : > { %v2385_v40 = vpop.permute.xlu1 %2384 }
0x10d8   : > { %v2395_v42 = vsel %vm710_vm3, %v2049_v59, %v2385_v40  ;;  %v4227_v40 = vld [vmem:[#allocation7 + $0x8a8] ss:$72 sps:$4 sm:$0xff]  }
0x10d9   : > { %v4228_v59 = vld [vmem:[#allocation7 + $0x428] ss:$72 sps:$4 sm:$0xff]  }
0x10df   : > { %v2389_v41 = vpop.permute.xlu0 %2388 }
0x10e0   : > { %v2396_v43 = vsel %vm1163_vm7, %v2395_v42, %v2389_v41  ;;  %v2556_v41 = vld [vmem:[#allocation8 + $0x13] sm:$0x3] }
0x10e1   : > { %v2562_v42 = vrot.slane %v2556_v41, %v4794_v4 }
0x10e7   : > { %v2393_v44 = vpop.permute.xlu1 %2392 }
0x10e8   : > { %v2397_v45 = vsel %vm1165_vm8, %v2396_v43, %v2393_v44  ;;  %v2566_v43 = vrot.slane %v2556_v41, %v4789_v62 }
0x10e9   : > { %v2415_v46 = vpack.c.bf16 %v2397_v45, %v2397_v45 }
0x10eb   : > { %3910 = vmatmul.mubr.bf16.vlgmr.msra.gmra.mrb[36].mxu0 %v2415_v46 }
0x10ec   : > { %3669 = vmatpush3.bf16.msra.mxu0 %v4214_v49  ;;  %v4239_v49 = vld [vmem:[#allocation7 + $0x160] ss:$72 sps:$4 sm:$0xff]  }
0x10ed   : > { %3670 = vmatprep.subr.bf16.mxu0 %v4215_v20  ;;  %v4240_v20 = vld [vmem:[#allocation7 + $0x1f0] ss:$72 sps:$4 sm:$0xff]  }
0x10f0   : > { %3671 = vmatpush3.bf16.msra.mxu0 %v4216_v27 }
0x10f1   : > { %3672 = vmatprep.subr.bf16.mxu0 %v4217_v28 }
0x10f4   : > { %3673 = vmatpush3.bf16.msra.mxu0 %v4218_v29 }
0x10f5   : > { %3674 = vmatprep.subr.bf16.mxu0 %v4219_v30 }
0x10f8   : > { %3675 = vmatpush3.bf16.msra.mxu0 %v4220_v31 }
0x10f9   : > { %3676 = vmatprep.subr.bf16.mxu0 %v4221_v32 }
0x10fc   : > { %3677 = vmatpush3.bf16.msra.mxu0 %v4222_v34 }
0x10fd   : > { %3678 = vmatprep.subr.bf16.mxu0 %v4223_v35 }
0x1100   : > { %3679 = vmatpush3.bf16.msra.mxu0 %v4224_v36 }
0x1101   : > { %3680 = vmatprep.subr.bf16.mxu0 %v4225_v38  ;;  %v3540_v38 = vld [vmem:[#allocation8 + $0x16] ss:$0 sm:$0xff] }
0x1104   : > { %3681 = vmatpush3.bf16.msra.mxu0 %v4226_v39 }
0x1105   : > { %3682 = vmatprep.subr.bf16.mxu0 %v4227_v40  ;;  %v3541_v40 = vld [vmem:[#allocation8 + $0x17] ss:$0 sm:$0xff] }
0x1108   : > { %3683 = vmatpush3.bf16.msra.mxu0 %v4228_v59 }
0x1109   : > { %3933 = vmatprep.subr.bf16.mxu0 %v4504_v1 }
0x11be   : > { %v2504_v33 = vpop.f32.mrb[36].mxu0 }
0x11bf   : > { %v2505_v53 = vadd.f32 %v3496_v52, %v2504_v33  ;;  %v3911_v54 = vpop.f32.mrb[37].mxu0 }
0x11c0   : > { %v2507_v55 = vpop.f32.mrb[38].mxu0 }
0x11c1   : > { %v2510_v26 = vadd.f32 %v2505_v53, %v4911_v37  ;;  %v3912_v61 = vpop.f32.mrb[39].mxu0  ;;  %v4209_v37 = vld [vmem:[#allocation7 + $0x394] ss:$72 sps:$4 sm:$0xff]  }
0x11c2   : > { %2661 = vmatprep.subr.bf16.mxu1 %v4209_v37 }
0x11c3   : > { %2513 = vadd.xlane.f32.xlu1 %v2510_v26  ;;  %v2516_v2 = vmul.f32 %v2510_v26, %v2510_v26  ;;  %2662 = vmatpush1.bf16.msra.mxu1 %v4207_v8  ;;  %v4229_v8 = vld [vmem:[#allocation7 + $0x3c] ss:$72 sps:$4 sm:$0xff]  }
0x11c4   : > { %2663 = vmatprep.subr.bf16.mxu1 %v4212_v9 }
0x11c5   : > { %2517 = vadd.xlane.f32.xlu0 %v2516_v2 }
0x11c7   : > { %2664 = vmatpush1.bf16.msra.mxu1 %v4210_v10  ;;  %v3523_v10 = vld [vmem:[#allocation8 + $0x15] ss:$0 sm:$0xff] }
0x11c8   : > { %3913 = vmatprep.subr.bf16.mxu1 %v4504_v1 }
0x1250   : > { %v2514_v11 = vpop.xlane.xlu1 %2513 }
0x1251   : > { %v2515_v12 = vmul.f32 0.0078125, %v2514_v11 }
0x1252   : > { %v2518_v58 = vpop.xlane.xlu0 %2517 }
0x1253   : > { %v2520_v13 = vmul.f32 %v2515_v12, %v2515_v12  ;;  %v2519_v0 = vmul.f32 0.0078125, %v2518_v58  ;;  %v2522_v16 = vsub.f32 %v2510_v26, %v2515_v12 }
0x1255   : > { %v2521_v14 = vsub.f32 %v2519_v0, %v2520_v13 }
0x1257   : > { %v2523_v15 = vadd.f32 1e-05, %v2521_v14 }
0x1259   : > { %4295 = vrsqrt.f32 %v2523_v15 }
0x1263   : > { %v4296_v17 = vpop.eup %4295 }
0x1264   : > { %v2525_v19 = vmul.f32 %v4296_v17, %v2522_v16  ;;  %v4230_v16 = vld [vmem:[#allocation7 + $0xcc] ss:$72 sps:$4 sm:$0xff]   ;;  %v4231_v17 = vld [vmem:[#allocation7 + $0x15c] ss:$72 sps:$4 sm:$0xff]  }
0x1266   : > { %v2532_v22 = vmul.f32 %v3505_v18, %v2525_v19  ;;  %v4232_v18 = vld [vmem:[#allocation7 + $0x1ec] ss:$72 sps:$4 sm:$0xff]   ;;  %v4233_v19 = vld [vmem:[#allocation7 + $0x27c] ss:$72 sps:$4 sm:$0xff]  }
0x1268   : > { %v5011_v23 = vadd.f32 %v3506_v21, %v2532_v22  ;;  %v4234_v21 = vld [vmem:[#allocation7 + $0x30c] ss:$72 sps:$4 sm:$0xff]   ;;  %v4235_v22 = vld [vmem:[#allocation7 + $0x39c] ss:$72 sps:$4 sm:$0xff]  }
0x126a   : > { %v2557_v24 = vpack.c.bf16 %v5011_v23, %v5011_v23 }
0x126c   : > { %2682 = vmatmul.mubr.bf16.vlgmr.msra.gmra.mrb[60].mxu1 %v2557_v24  ;;  %v4237_v24 = vld [vmem:[#allocation7 + $0x40] ss:$72 sps:$4 sm:$0xff]  }
0x126d   : > { %3929 = vmatprep.mubr.msk.bf16.mxu1 %vm4505_vm0, %v4504_v1  ;;  %3914 = vmatpush3.bf16.msra.mxu1 %v4229_v8 }
0x126e   : > { %3915 = vmatprep.subr.bf16.mxu1 %v4504_v1 }
0x1271   : > { %3916 = vmatpush3.bf16.msra.mxu1 %v4230_v16 }
0x1272   : > { %3917 = vmatprep.subr.bf16.mxu1 %v4504_v1 }
0x1275   : > { %3918 = vmatpush3.bf16.msra.mxu1 %v4231_v17 }
0x1276   : > { %3919 = vmatprep.subr.bf16.mxu1 %v4504_v1 }
0x1279   : > { %3920 = vmatpush3.bf16.msra.mxu1 %v4232_v18 }
0x127a   : > { %3921 = vmatprep.subr.bf16.mxu1 %v4504_v1 }
0x127d   : > { %3922 = vmatpush3.bf16.msra.mxu1 %v4233_v19 }
0x127e   : > { %3923 = vmatprep.subr.bf16.mxu1 %v4504_v1 }
0x1281   : > { %3924 = vmatpush3.bf16.msra.mxu1 %v4234_v21 }
0x1282   : > { %3925 = vmatprep.subr.bf16.mxu1 %v4504_v1 }
0x1285   : > { %3926 = vmatpush3.bf16.msra.mxu1 %v4235_v22 }
0x1286   : > { %3927 = vmatprep.subr.bf16.mxu1 %v4504_v1 }
0x133f   : > { %v2683_v44 = vpop.f32.mrb[60].mxu1 }
0x1340   : > { %v2684_v45 = vadd.f32 %v2683_v44, %v2562_v42  ;;  %v2685_v46 = vpop.f32.mrb[61].mxu1  ;;  %v4242_v44 = vld [vmem:[#allocation7 + $0x310] ss:$72 sps:$4 sm:$0xff]  }
0x1341   : > { %v2686_v47 = vadd.f32 %v2685_v46, %v2566_v43  ;;  %v2687_v48 = vpop.f32.mrb[62].mxu1  ;;  %v4241_v43 = vld [vmem:[#allocation7 + $0x280] ss:$72 sps:$4 sm:$0xff]   ;;  %v4244_v46 = vld [vmem:[#allocation7 + $0x430] ss:$72 sps:$4 sm:$0xff]  }
0x1342   : > { %v2690_v50 = vmul.f32 %v2684_v45, %v2684_v45  ;;  %v2688_v51 = vpop.f32.mrb[63].mxu1  ;;  %v4246_v48 = vld [vmem:[#allocation7 + $0xd4] ss:$72 sps:$4 sm:$0xff]  }
0x1343   : > { %v2691_v52 = vmul.f32 %v2686_v47, %v2686_v47  ;;  %v4248_v51 = vld [vmem:[#allocation7 + $0x1f4] ss:$72 sps:$4 sm:$0xff]  }
0x1344   : > { %v2692_v33 = vmul.f32 %v2690_v50, %v2684_v45  ;;  %v4247_v50 = vld [vmem:[#allocation7 + $0x164] ss:$72 sps:$4 sm:$0xff]  }
0x1345   : > { %v2693_v53 = vmul.f32 %v2691_v52, %v2686_v47  ;;  %v4249_v52 = vld [vmem:[#allocation7 + $0x284] ss:$72 sps:$4 sm:$0xff]  }
0x1346   : > { %v2694_v54 = vmul.f32 0.044715, %v2692_v33  ;;  %v4250_v33 = vld [vmem:[#allocation7 + $0x314] ss:$72 sps:$4 sm:$0xff]  }
0x1347   : > { %v2695_v55 = vmul.f32 0.044715, %v2693_v53  ;;  %v2931_v53 = vld [vmem:[#allocation8 + $0x18] sm:$0x1] }
0x1348   : > { %v2696_v26 = vadd.f32 %v2694_v54, %v2684_v45 }
0x1349   : > { %v2697_v61 = vadd.f32 %v2695_v55, %v2686_v47 }
0x134a   : > { %v2698_v2 = vmul.f32 0.7978846, %v2696_v26 }
0x134b   : > { %v2699_v57 = vmul.f32 0.7978846, %v2697_v61 }
0x134c   : > { %4297 = vtanh.f32 %v2698_v2 }
0x134d   : > { %4299 = vtanh.f32 %v2699_v57 }
0x1356   : > { %v4298_v4 = vpop.eup %4297 }
0x1357   : > { %v4300_v62 = vpop.eup %4299  ;;  %v2702_v56 = vadd.f32 1.0, %v4298_v4 }
0x1358   : > { %v2703_v60 = vadd.f32 1.0, %v4300_v62  ;;  %v4251_v62 = vld [vmem:[#allocation7 + $0x3a4] ss:$72 sps:$4 sm:$0xff]  }
0x1359   : > { %v2704_v63 = vmul.f32 0.5, %v2702_v56  ;;  %v4252_v56 = vld [vmem:[#allocation7 + $0x434] ss:$72 sps:$4 sm:$0xff]  }
0x135a   : > { %v2705_v3 = vmul.f32 0.5, %v2703_v60  ;;  %v3038_v60 = vld [vmem:[#allocation8 + $0x19] sm:$0x1] }
0x135b   : > { %v2706_v5 = vmul.f32 %v2704_v63, %v2684_v45  ;;  %v4243_v45 = vld [vmem:[#allocation7 + $0x3a0] ss:$72 sps:$4 sm:$0xff]  }
0x135c   : > { %v2707_v6 = vmul.f32 %v2705_v3, %v2686_v47  ;;  %v4245_v47 = vld [vmem:[#allocation7 + $0x44] ss:$72 sps:$4 sm:$0xff]  }
0x135d   : > { %v2741_v37 = vpack.c.bf16 %v2706_v5, %v2706_v5 }
0x135e   : > { %v2742_v7 = vpack.c.bf16 %v2707_v6, %v2707_v6 }
0x1360   : > { %2877 = vmatprep.mubr.bf16.mxu0 %v2742_v7 }
0x1361   : > { %2878 = vmatmul.mubr.bf16.vlgmr.msra.gmra.mrb[40].mxu0 %v2741_v37 }
0x1362   : > { %3949 = vmatprep.mubr.msk.bf16.mxu0 %vm4505_vm0, %v4504_v1  ;;  %3934 = vmatpush3.bf16.msra.mxu0 %v4237_v24 }
0x1363   : > { %3935 = vmatprep.subr.bf16.mxu0 %v4504_v1 }
0x1366   : > { %3936 = vmatpush3.bf16.msra.mxu0 %v4238_v25 }
0x1367   : > { %3937 = vmatprep.subr.bf16.mxu0 %v4504_v1 }
0x136a   : > { %3938 = vmatpush3.bf16.msra.mxu0 %v4239_v49 }
0x136b   : > { %3939 = vmatprep.subr.bf16.mxu0 %v4504_v1 }
0x136e   : > { %3940 = vmatpush3.bf16.msra.mxu0 %v4240_v20 }
0x136f   : > { %3941 = vmatprep.subr.bf16.mxu0 %v4504_v1 }
0x1372   : > { %3942 = vmatpush3.bf16.msra.mxu0 %v4241_v43 }
0x1373   : > { %3943 = vmatprep.subr.bf16.mxu0 %v4504_v1 }
0x1376   : > { %3944 = vmatpush3.bf16.msra.mxu0 %v4242_v44 }
0x1377   : > { %3945 = vmatprep.subr.bf16.mxu0 %v4504_v1 }
0x137a   : > { %3946 = vmatpush3.bf16.msra.mxu0 %v4243_v45 }
0x137b   : > { %3947 = vmatprep.subr.bf16.mxu0 %v4504_v1 }
0x137e   : > { %3948 = vmatpush3.bf16.msra.mxu0 %v4244_v46 }
0x1434   : > { %v3684_v9 = vpop.f32.mrb[40].mxu0 }
0x1435   : > { %v3685_v11 = vpop.f32.mrb[41].mxu0 }
0x1436   : > { %v3686_v12 = vadd.f32 %v3685_v11, %v3684_v9  ;;  %v3687_v58 = vpop.f32.mrb[42].mxu0  ;;  %v3145_v9 = vld [vmem:[#allocation8 + $0x1a] sm:$0x1] }
0x1437   : > { %v3688_v13 = vpop.f32.mrb[43].mxu0 }
0x1438   : > { %v2880_v0 = vadd.f32 %v3686_v12, %v3523_v10 }
0x143a   : > { %v2885_v14 = vadd.f32 %v2880_v0, %v5011_v23  ;;  %v4236_v23 = vld [vmem:[#allocation7 + $0x42c] ss:$72 sps:$4 sm:$0xff]  }
0x143b   : > { %3928 = vmatpush3.bf16.msra.mxu1 %v4236_v23 }
0x143c   : > { %2888 = vadd.xlane.f32.xlu0 %v2885_v14  ;;  %v2891_v15 = vmul.f32 %v2885_v14, %v2885_v14  ;;  %3953 = vmatprep.subr.bf16.mxu1 %v4504_v1 }
0x143e   : > { %2892 = vadd.xlane.f32.xlu1 %v2891_v15 }
0x14c9   : > { %v2889_v27 = vpop.xlane.xlu0 %2888 }
0x14ca   : > { %v2890_v28 = vmul.f32 0.0078125, %v2889_v27 }
0x14cb   : > { %v2893_v29 = vpop.xlane.xlu1 %2892 }
0x14cc   : > { %v2895_v30 = vmul.f32 %v2890_v28, %v2890_v28  ;;  %v2894_v31 = vmul.f32 0.0078125, %v2893_v29  ;;  %v2897_v35 = vsub.f32 %v2885_v14, %v2890_v28 }
0x14ce   : > { %v2896_v32 = vsub.f32 %v2894_v31, %v2895_v30 }
0x14d0   : > { %v2898_v34 = vadd.f32 1e-05, %v2896_v32 }
0x14d2   : > { %4301 = vrsqrt.f32 %v2898_v34 }
0x14dc   : > { %v4302_v36 = vpop.eup %4301 }
0x14dd   : > { %v2900_v39 = vmul.f32 %v4302_v36, %v2897_v35 }
0x14df   : > { %v2907_v59 = vmul.f32 %v3540_v38, %v2900_v39 }
0x14e1   : > { %v2914_v41 = vadd.f32 %v3541_v40, %v2907_v59 }
0x14e3   : > { %v2932_v42 = vpack.c.bf16 %v2914_v41, %v2914_v41 }
0x14e5   : > { %3930 = vmatmul.mubr.bf16.vlgmr.msra.gmra.mrb[64].mxu1 %v2932_v42 }
0x14e6   : > { %3969 = vmatprep.mubr.msk.bf16.mxu1 %vm4505_vm0, %v4504_v1  ;;  %3954 = vmatpush3.bf16.msra.mxu1 %v4245_v47 }
0x14e7   : > { %3955 = vmatprep.subr.bf16.mxu1 %v4504_v1 }
0x14ea   : > { %3956 = vmatpush3.bf16.msra.mxu1 %v4246_v48 }
0x14eb   : > { %3957 = vmatprep.subr.bf16.mxu1 %v4504_v1 }
0x14ee   : > { %3958 = vmatpush3.bf16.msra.mxu1 %v4247_v50 }
0x14ef   : > { %3959 = vmatprep.subr.bf16.mxu1 %v4504_v1 }
0x14f2   : > { %3960 = vmatpush3.bf16.msra.mxu1 %v4248_v51 }
0x14f3   : > { %3961 = vmatprep.subr.bf16.mxu1 %v4504_v1 }
0x14f6   : > { %3962 = vmatpush3.bf16.msra.mxu1 %v4249_v52 }
0x14f7   : > { %3963 = vmatprep.subr.bf16.mxu1 %v4504_v1 }
0x14fa   : > { %3964 = vmatpush3.bf16.msra.mxu1 %v4250_v33 }
0x14fb   : > { %3965 = vmatprep.subr.bf16.mxu1 %v4504_v1 }
0x14fe   : > { %3966 = vmatpush3.bf16.msra.mxu1 %v4251_v62 }
0x14ff   : > { %3967 = vmatprep.subr.bf16.mxu1 %v4504_v1 }
0x1502   : > { %3968 = vmatpush3.bf16.msra.mxu1 %v4252_v56 }
0x15b8   : > { %v3015_v54 = vpop.f32.mrb[64].mxu1 }
0x15b9   : > { %v3016_v55 = vadd.f32 %v3015_v54, %v2931_v53  ;;  %v3931_v26 = vpop.f32.mrb[65].mxu1 }
0x15ba   : > { %v3018_v61 = vpop.f32.mrb[66].mxu1 }
0x15bb   : > { %4303 = vtanh.f32 %v3016_v55  ;;  %v3932_v2 = vpop.f32.mrb[67].mxu1 }
0x15c5   : > { %v4304_v57 = vpop.eup %4303 }
0x15c6   : > { %v3039_v4 = vpack.c.bf16 %v4304_v57, %v4304_v57 }
0x15c8   : > { %3950 = vmatmul.mubr.bf16.vlgmr.msra.gmra.mrb[44].mxu0 %v3039_v4 }
0x169b   : > { %v3122_v63 = vpop.f32.mrb[44].mxu0 }
0x169c   : > { %v3123_v3 = vadd.f32 %v3122_v63, %v3038_v60  ;;  %v3951_v5 = vpop.f32.mrb[45].mxu0 }
0x169d   : > { %v3125_v6 = vpop.f32.mrb[46].mxu0 }
0x169e   : > { %v3128_v7 = vmax.f32 %v3123_v3, 0.0  ;;  %v3952_v37 = vpop.f32.mrb[47].mxu0 }
0x16a0   : > { %v3146_v8 = vpack.c.bf16 %v3128_v7, %v3128_v7 }
0x16a2   : > { %3970 = vmatmul.mubr.bf16.vlgmr.msra.gmra.mrb[68].mxu1 %v3146_v8 }
0x1775   : > { %v3229_v10 = vpop.f32.mrb[68].mxu1 }
0x1776   : > { %v3230_v11 = vadd.f32 %v3229_v10, %v3145_v9  ;;  %v3971_v12 = vpop.f32.mrb[69].mxu1 }
0x1777   : > { %v3232_v58 = vpop.f32.mrb[70].mxu1 }
0x1778   : > { %v3972_v1 = vpop.f32.mrb[71].mxu1  ;;  %v3235_v13 = vmul.f32 %v3230_v11, %v3230_v11 }
0x177a   : > { %v3237_v0 = vsel %vm3236_vm9, %v3235_v13, 0.0 }
0x177b   : > { %3238 = vadd.xlane.f32.xlu0 %v3237_v0 }
0x1808   : > { %v3239_v14 = vpop.xlane.xlu0 %3238 }
0x1809   : > { %v3240_v15 = vadd.f32 1e-12, %v3239_v14 }
0x180b   : > { %4305 = vrsqrt.f32 %v3240_v15 }
0x1815   : > { %v4306_v16 = vpop.eup %4305 }
0x1816   : > { %v3242_v17 = vmul.f32 %v4306_v16, %v3230_v11 }
0x1818   : > { %3243 = vst [vmem:[%s288_s27] sm:$0x1] %v3242_v17 }
0x1819   : > { %4434 = shalt.err (!%p4431_p5)
}
0x181a   : > { %s4435_s30 = scalar_lea.hbm %s5052_s28, 16  ;;  %s4439_s13 = scalar_lea.hbm %s5101_s5, 32 }
0x181b   : > { %p4436_p0 = scmp.ne.s32.totalorder %s5052_s28, %s4435_s30  ;;  %p4440_p12 = scmp.lt.u32.totalorder %s5052_s28, %s5101_s5 }
0x181c   : > { %p4441_p2 = scmp.lt.u32.totalorder %s4439_s13, %s4435_s30  ;;  %p4443_p4 = scmp.lt.u32.totalorder %s4435_s30, %s5052_s28 }
0x181d   : > { %p4437_p9 = pnand %p4436_p0, %p4680_p6 }
0x181e   : > { %p4442_p1 = por %p4441_p2, %p4440_p12 }
0x181f   : > { %p4438_p11 = pneg %p4437_p9 }
0x1820   : > { %p4444_p8 = por %p4443_p4, %p4442_p1 }
0x1822   : > { %p4445_p3 = pnand %p4444_p8, %p4438_p11 }
0x1824   : > { %4448 = shalt.err (!%p4445_p3)
}
0x1825   : > { %3987 = dma.vmem_to_hbm [thread:$0]  (%p4680_p6), %s5054_s8, 16, %s5052_s28, %s3245_s15  }
0x1826 PF: > { %s3269_s29 = sand.u32 1, %s4483_s18   ;;  %p5119_p7 = scmp.ne.s32.totalorder %s5106_s25, 0 }
0x1827   : > { %p5120_p10 = scmp.ge.s32.totalorder %s4495_s21, 2  ;;  %s3270_s27 = scalar_lea.sflag [#allocation4], %s3269_s29 }
0x1829   : > { %p4004_p13 = pnand %p5120_p10, %p5119_p7 }
0x182b   : > { %4478 = dma.done.wait (!%p4004_p13), %s3270_s27, 16  }
0x182c   : > { %4480 = vsyncadd (!%p4004_p13), %s3270_s27, 4294967280  ;;  %p20_p5 = scmp.ge.s32.totalorder %s4666_s14, 4   ;;  %s5121_s18 = smov %s4487_s19 }
0x182d   : > { %s5122_s19 = smov %s4491_s20  ;;  %s5123_s20 = smov %s4676_s17 }
0x182e   : > { %s5124_s21 = smov %s4666_s14  ;;  %22 = sbr.rel (!%p20_p5) target bundleno = 7 (0x7), region = 100 }
0x1835   :  { %3274 = vsyncpa [#allocation3], 1 }
0x1836   :  { %3276 = vsyncpa [#allocation3 + $0x1], 1 }
0x1837   :  { %3277 = vsyncpa [#allocation6], 1 }
0x1838   :  { %3278 = vsyncpa [#allocation9], 1 }
0x1839   :  { %3279 = vsyncpa [#allocation4], 1 }
0x183a   :  { %3281 = vsyncpa [#allocation4 + $0x1], 1 }

</bundles_post_ra>
